<compile_context>
chip_gen: v7x
topology: tpu7x:2x2x1
jax: 0.10.0
libtpu: 0.0.40
codegen_flags: <defaults>
</compile_context>

<pallas_src>
import math

import jax
import jax.numpy as jnp
from jax.experimental import pallas as pl
from jax.experimental.pallas import tpu as pltpu

BN_EPS = 1e-5
LANE = 128
# bf16 weights/activations into the MXU (f32 accumulate). Set to jnp.float32 for
# bit-closer parity with the f32 PyTorch reference.
WEIGHT_DTYPE = jnp.bfloat16


def _round_up(n, m):
    return (n + m - 1) // m * m


def make_mlp_kernel(num_blocks, batch, padded_dim):
    """Fused forward: input Linear+ReLU+BN, `num_blocks` HiddenBlocks, output Linear+sigmoid."""
    n_bn = 1 + num_blocks          # input layer + each hidden block has a BatchNorm
    P = padded_dim

    def kernel(x_ref, w_ref, vec_ref, o_ref):
        # One small load for all per-feature row vectors:
        # rows [3l, 3l+1, 3l+2] = bias/gamma/beta of BN layer l; last row = output bias.
        vecs = vec_ref[...]                                   # [3*n_bn + 1, P] f32

        # 1/B row: pushes BatchNorm statistics onto the MXU.
        #   [1, B] @ [B, 2P] -> [1, 2P] = [E[h] | E[h^2]]     (f32 in, f32 accumulate)
        inv_b = jnp.full((1, batch), 1.0 / batch, jnp.float32)

        def batchnorm_train(h, gamma, beta):
            stats = jnp.dot(inv_b, jnp.concatenate([h, h * h], axis=-1),
                            preferred_element_type=jnp.float32)
            mean = stats[:, :P]
            mean_sq = stats[:, P:]
            var = jnp.maximum(mean_sq - mean * mean, 0.0)     # biased variance
            inv = jax.lax.rsqrt(var + BN_EPS)
            scale = gamma * inv
            shift = beta - mean * scale
            return h * scale + shift

        h_lo = x_ref[...]                                     # bf16, cast/padded in wrapper
        # Python loop intentionally unrolled at trace time (short, fixed layer count).
        for l in range(n_bn):
            w = w_ref[l]                                      # [P, P] bf16
            b = vecs[3 * l:3 * l + 1, :]
            g = vecs[3 * l + 1:3 * l + 2, :]
            be = vecs[3 * l + 2:3 * l + 3, :]
            h = jnp.dot(h_lo, w, preferred_element_type=jnp.float32) + b
            h = jnp.maximum(h, 0.0)                           # ReLU
            h = batchnorm_train(h, g, be)                     # BN math in f32
            # Dropout: identity (see TODO at top of file).
            h_lo = h.astype(w_ref.dtype)                      # bf16 only right before next dot

        # output_layer -> sigmoid
        w = w_ref[n_bn]
        b_out = vecs[3 * n_bn:3 * n_bn + 1, :]
        logits = jnp.dot(h_lo, w, preferred_element_type=jnp.float32) + b_out
        o_ref[...] = jax.nn.sigmoid(logits)

    return kernel


def init_params(key, input_dim, hidden_units, output_dim):
    """Deterministic init mirroring nn.Linear (U(-1/sqrt(fan_in), 1/sqrt(fan_in)))
    and nn.BatchNorm1d (gamma=1, beta=0). Weights stored [in, out], f32."""

    def linear(key, fan_in, fan_out):
        k_w, k_b = jax.random.split(key)
        bound = 1.0 / math.sqrt(float(fan_in))
        w = jax.random.uniform(k_w, (fan_in, fan_out), jnp.float32, -bound, bound)
        b = jax.random.uniform(k_b, (1, fan_out), jnp.float32, -bound, bound)
        return w, b

    def bn(dim):
        return jnp.ones((1, dim), jnp.float32), jnp.zeros((1, dim), jnp.float32)

    keys = jax.random.split(key, len(hidden_units) + 1)
    params = []

    w, b = linear(keys[0], input_dim, hidden_units[0])
    g, be = bn(hidden_units[0])
    params += [w, b, g, be]

    for i in range(len(hidden_units) - 1):
        w, b = linear(keys[i + 1], hidden_units[i], hidden_units[i + 1])
        g, be = bn(hidden_units[i + 1])
        params += [w, b, g, be]

    w, b = linear(keys[-1], hidden_units[-1], output_dim)
    params += [w, b]
    return params


def _pack_params(params, num_blocks, input_dim):
    """Zero-pad every layer to a uniform lane-dense width P and pack into two slabs:
       weights -> [L, P, P] bf16, per-feature vectors -> [3*n_bn + 1, P] f32."""
    layers = []
    idx = 0
    for _ in range(1 + num_blocks):           # input layer + hidden blocks: [w, b, gamma, beta]
        layers.append(params[idx:idx + 4])
        idx += 4
    w_out, b_out = params[idx:idx + 2]

    dims = [input_dim] + [w.shape[1] for (w, _, _, _) in layers] + [w_out.shape[1]]
    P = _round_up(max(dims), LANE)

    w_slab = []
    vec_rows = []
    for (w, b, g, be) in layers:
        kin, kout = w.shape
        w_slab.append(jnp.pad(w, ((0, P - kin), (0, P - kout))).astype(WEIGHT_DTYPE))
        vec_rows.append(jnp.pad(b, ((0, 0), (0, P - kout))))
        vec_rows.append(jnp.pad(g, ((0, 0), (0, P - kout)), constant_values=1.0))
        vec_rows.append(jnp.pad(be, ((0, 0), (0, P - kout))))
    kin, kout = w_out.shape
    w_slab.append(jnp.pad(w_out, ((0, P - kin), (0, P - kout))).astype(WEIGHT_DTYPE))
    vec_rows.append(jnp.pad(b_out, ((0, 0), (0, P - kout))))

    return jnp.stack(w_slab, axis=0), jnp.concatenate(vec_rows, axis=0), P


def mlp_forward(x, params, num_blocks, output_dim):
    batch, input_dim = x.shape
    w_slab, vec_slab, P = _pack_params(params, num_blocks, input_dim)

    # Pad to lane-dense width and cast to bf16 in the wrapper (halves the input DMA).
    x_p = jnp.pad(x, ((0, 0), (0, P - input_dim))).astype(WEIGHT_DTYPE)

    n_layers = 2 + num_blocks                  # all Linear layers
    n_bn = 1 + num_blocks
    flops = n_layers * 2 * batch * P * P + n_bn * 2 * batch * (2 * P)   # + BN stats matmuls
    transcendentals = n_bn * P + batch * P                              # rsqrt + sigmoid
    bytes_accessed = (x_p.size * x_p.dtype.itemsize
                      + w_slab.size * w_slab.dtype.itemsize
                      + vec_slab.size * vec_slab.dtype.itemsize
                      + batch * P * 4)

    vmem_spec = pl.BlockSpec(memory_space=pltpu.MemorySpace.VMEM)

    out_p = pl.pallas_call(
        make_mlp_kernel(num_blocks, batch, P),
        out_shape=jax.ShapeDtypeStruct((batch, P), jnp.float32),
        in_specs=[vmem_spec, vmem_spec, vmem_spec],
        out_specs=vmem_spec,
        compiler_params=pltpu.CompilerParams(
            # Actual resident footprint is well under 1 MiB; 32 MiB is within the scoped
            # default on every generation (v7x physical VMEM is 64 MiB). If hidden dims
            # grow into the thousands, switch to a pipelined per-layer weight grid instead
            # of keeping all weights resident.
            vmem_limit_bytes=32 * 1024 * 1024,
        ),
        cost_estimate=pl.CostEstimate(
            flops=int(flops),
            transcendentals=int(transcendentals),
            bytes_accessed=int(bytes_accessed),
        ),
    )(x_p, w_slab, vec_slab)

    # Slice the real output columns off the lane-dense result.
    return out_p[:, :output_dim]


if __name__ == "__main__":
    # Batch >= 128 so each MXU pass does useful work; feature dims are small but get
    # zero-padded to 128 lanes inside the wrapper.
    batch = 256
    input_dim = 16
    hidden_units = (32, 64, 32)
    output_dim = 4
    num_blocks = len(hidden_units) - 1

    root = jax.random.PRNGKey(0)
    k_x, k_p = jax.random.split(root)

    x = jax.random.normal(k_x, (batch, input_dim), jnp.float32)
    params = init_params(k_p, input_dim, hidden_units, output_dim)

    out = mlp_forward(x, params, num_blocks, output_dim)
    out = jax.block_until_ready(out)

    assert out.shape == (batch, output_dim)
    assert bool(jnp.all(jnp.isfinite(out)))
    assert bool(jnp.all((out >= 0.0) & (out <= 1.0)))  # sigmoid range
    print("KERNEL_OK")
</pallas_src>

<mosaic_0001>
module attributes {stable_mosaic.version = 11 : i64} {
  func.func @kernel(%arg0: memref<256x128xbf16, #tpu.memory_space<vmem>>, %arg1: memref<4x128x128xbf16, #tpu.memory_space<vmem>>, %arg2: memref<10x128xf32, #tpu.memory_space<vmem>>, %arg3: memref<256x128xf32, #tpu.memory_space<vmem>>) attributes {dimension_semantics = [], scalar_prefetch = 0 : i64, scratch_operands = 0 : i64, tpu.core_type = #tpu.core_type<tc>} {
    %c0 = arith.constant 0 : index
    %c0_0 = arith.constant 0 : index
    %0 = vector.load %arg2[%c0, %c0_0] : memref<10x128xf32, #tpu.memory_space<vmem>>, vector<10x128xf32>
    %cst = arith.constant 3.906250e-03 : f32
    %1 = vector.broadcast %cst : f32 to vector<1x256xf32>
    %c0_1 = arith.constant 0 : index
    %c0_2 = arith.constant 0 : index
    %2 = vector.load %arg0[%c0_1, %c0_2] : memref<256x128xbf16, #tpu.memory_space<vmem>>, vector<256x128xbf16>
    %c0_3 = arith.constant 0 : index
    %c0_4 = arith.constant 0 : index
    %c0_5 = arith.constant 0 : index
    %3 = vector.load %arg1[%c0_3, %c0_4, %c0_5] : memref<4x128x128xbf16, #tpu.memory_space<vmem>>, vector<1x128x128xbf16>
    %4 = vector.shape_cast %3 : vector<1x128x128xbf16> to vector<128x128xbf16>
    %5 = vector.extract_strided_slice %0 {offsets = [0, 0], sizes = [1, 128], strides = [1, 1]} : vector<10x128xf32> to vector<1x128xf32>
    %6 = vector.extract_strided_slice %0 {offsets = [1, 0], sizes = [1, 128], strides = [1, 1]} : vector<10x128xf32> to vector<1x128xf32>
    %7 = vector.extract_strided_slice %0 {offsets = [2, 0], sizes = [1, 128], strides = [1, 1]} : vector<10x128xf32> to vector<1x128xf32>
    %cst_6 = arith.constant dense<0.000000e+00> : vector<256x128xf32>
    %8 = tpu.matmul %2, %4, %cst_6 {dimension_numbers = #tpu.dot_dimension_numbers<[1], [0], [0], [1], [0, 0, 1, 1], [], []>} : vector<256x128xbf16>, vector<128x128xbf16>, vector<256x128xf32> -> vector<256x128xf32>
    %9 = vector.broadcast %5 : vector<1x128xf32> to vector<256x128xf32>
    %10 = arith.addf %8, %9 : vector<256x128xf32>
    %cst_7 = arith.constant 0.000000e+00 : f32
    %11 = vector.broadcast %cst_7 : f32 to vector<256x128xf32>
    %12 = arith.maximumf %10, %11 : vector<256x128xf32>
    %13 = arith.mulf %12, %12 : vector<256x128xf32>
    %14 = tpu.concatenate %12, %13 in 1 : vector<256x128xf32>, vector<256x128xf32> -> vector<256x256xf32>
    %cst_8 = arith.constant dense<0.000000e+00> : vector<1x256xf32>
    %15 = tpu.matmul %1, %14, %cst_8 {dimension_numbers = #tpu.dot_dimension_numbers<[1], [0], [0], [1], [0, 0, 1, 1], [], []>} : vector<1x256xf32>, vector<256x256xf32>, vector<1x256xf32> -> vector<1x256xf32>
    %16 = vector.extract_strided_slice %15 {offsets = [0, 0], sizes = [1, 128], strides = [1, 1]} : vector<1x256xf32> to vector<1x128xf32>
    %17 = vector.extract_strided_slice %15 {offsets = [0, 128], sizes = [1, 128], strides = [1, 1]} : vector<1x256xf32> to vector<1x128xf32>
    %18 = arith.mulf %16, %16 : vector<1x128xf32>
    %19 = arith.subf %17, %18 : vector<1x128xf32>
    %cst_9 = arith.constant 0.000000e+00 : f32
    %20 = vector.broadcast %cst_9 : f32 to vector<1x128xf32>
    %21 = arith.maximumf %19, %20 : vector<1x128xf32>
    %cst_10 = arith.constant 9.99999974E-6 : f32
    %22 = vector.broadcast %cst_10 : f32 to vector<1x128xf32>
    %23 = arith.addf %21, %22 : vector<1x128xf32>
    %24 = math.rsqrt %23 : vector<1x128xf32>
    %25 = arith.mulf %6, %24 : vector<1x128xf32>
    %26 = arith.mulf %16, %25 : vector<1x128xf32>
    %27 = arith.subf %7, %26 : vector<1x128xf32>
    %28 = vector.broadcast %25 : vector<1x128xf32> to vector<256x128xf32>
    %29 = arith.mulf %12, %28 : vector<256x128xf32>
    %30 = vector.broadcast %27 : vector<1x128xf32> to vector<256x128xf32>
    %31 = arith.addf %29, %30 : vector<256x128xf32>
    %32 = arith.truncf %31 : vector<256x128xf32> to vector<256x128xbf16>
    %c1 = arith.constant 1 : index
    %c0_11 = arith.constant 0 : index
    %c0_12 = arith.constant 0 : index
    %33 = vector.load %arg1[%c1, %c0_11, %c0_12] : memref<4x128x128xbf16, #tpu.memory_space<vmem>>, vector<1x128x128xbf16>
    %34 = vector.shape_cast %33 : vector<1x128x128xbf16> to vector<128x128xbf16>
    %35 = vector.extract_strided_slice %0 {offsets = [3, 0], sizes = [1, 128], strides = [1, 1]} : vector<10x128xf32> to vector<1x128xf32>
    %36 = vector.extract_strided_slice %0 {offsets = [4, 0], sizes = [1, 128], strides = [1, 1]} : vector<10x128xf32> to vector<1x128xf32>
    %37 = vector.extract_strided_slice %0 {offsets = [5, 0], sizes = [1, 128], strides = [1, 1]} : vector<10x128xf32> to vector<1x128xf32>
    %cst_13 = arith.constant dense<0.000000e+00> : vector<256x128xf32>
    %38 = tpu.matmul %32, %34, %cst_13 {dimension_numbers = #tpu.dot_dimension_numbers<[1], [0], [0], [1], [0, 0, 1, 1], [], []>} : vector<256x128xbf16>, vector<128x128xbf16>, vector<256x128xf32> -> vector<256x128xf32>
    %39 = vector.broadcast %35 : vector<1x128xf32> to vector<256x128xf32>
    %40 = arith.addf %38, %39 : vector<256x128xf32>
    %cst_14 = arith.constant 0.000000e+00 : f32
    %41 = vector.broadcast %cst_14 : f32 to vector<256x128xf32>
    %42 = arith.maximumf %40, %41 : vector<256x128xf32>
    %43 = arith.mulf %42, %42 : vector<256x128xf32>
    %44 = tpu.concatenate %42, %43 in 1 : vector<256x128xf32>, vector<256x128xf32> -> vector<256x256xf32>
    %cst_15 = arith.constant dense<0.000000e+00> : vector<1x256xf32>
    %45 = tpu.matmul %1, %44, %cst_15 {dimension_numbers = #tpu.dot_dimension_numbers<[1], [0], [0], [1], [0, 0, 1, 1], [], []>} : vector<1x256xf32>, vector<256x256xf32>, vector<1x256xf32> -> vector<1x256xf32>
    %46 = vector.extract_strided_slice %45 {offsets = [0, 0], sizes = [1, 128], strides = [1, 1]} : vector<1x256xf32> to vector<1x128xf32>
    %47 = vector.extract_strided_slice %45 {offsets = [0, 128], sizes = [1, 128], strides = [1, 1]} : vector<1x256xf32> to vector<1x128xf32>
    %48 = arith.mulf %46, %46 : vector<1x128xf32>
    %49 = arith.subf %47, %48 : vector<1x128xf32>
    %cst_16 = arith.constant 0.000000e+00 : f32
    %50 = vector.broadcast %cst_16 : f32 to vector<1x128xf32>
    %51 = arith.maximumf %49, %50 : vector<1x128xf32>
    %cst_17 = arith.constant 9.99999974E-6 : f32
    %52 = vector.broadcast %cst_17 : f32 to vector<1x128xf32>
    %53 = arith.addf %51, %52 : vector<1x128xf32>
    %54 = math.rsqrt %53 : vector<1x128xf32>
    %55 = arith.mulf %36, %54 : vector<1x128xf32>
    %56 = arith.mulf %46, %55 : vector<1x128xf32>
    %57 = arith.subf %37, %56 : vector<1x128xf32>
    %58 = vector.broadcast %55 : vector<1x128xf32> to vector<256x128xf32>
    %59 = arith.mulf %42, %58 : vector<256x128xf32>
    %60 = vector.broadcast %57 : vector<1x128xf32> to vector<256x128xf32>
    %61 = arith.addf %59, %60 : vector<256x128xf32>
    %62 = arith.truncf %61 : vector<256x128xf32> to vector<256x128xbf16>
    %c2 = arith.constant 2 : index
    %c0_18 = arith.constant 0 : index
    %c0_19 = arith.constant 0 : index
    %63 = vector.load %arg1[%c2, %c0_18, %c0_19] : memref<4x128x128xbf16, #tpu.memory_space<vmem>>, vector<1x128x128xbf16>
    %64 = vector.shape_cast %63 : vector<1x128x128xbf16> to vector<128x128xbf16>
    %65 = vector.extract_strided_slice %0 {offsets = [6, 0], sizes = [1, 128], strides = [1, 1]} : vector<10x128xf32> to vector<1x128xf32>
    %66 = vector.extract_strided_slice %0 {offsets = [7, 0], sizes = [1, 128], strides = [1, 1]} : vector<10x128xf32> to vector<1x128xf32>
    %67 = vector.extract_strided_slice %0 {offsets = [8, 0], sizes = [1, 128], strides = [1, 1]} : vector<10x128xf32> to vector<1x128xf32>
    %cst_20 = arith.constant dense<0.000000e+00> : vector<256x128xf32>
    %68 = tpu.matmul %62, %64, %cst_20 {dimension_numbers = #tpu.dot_dimension_numbers<[1], [0], [0], [1], [0, 0, 1, 1], [], []>} : vector<256x128xbf16>, vector<128x128xbf16>, vector<256x128xf32> -> vector<256x128xf32>
    %69 = vector.broadcast %65 : vector<1x128xf32> to vector<256x128xf32>
    %70 = arith.addf %68, %69 : vector<256x128xf32>
    %cst_21 = arith.constant 0.000000e+00 : f32
    %71 = vector.broadcast %cst_21 : f32 to vector<256x128xf32>
    %72 = arith.maximumf %70, %71 : vector<256x128xf32>
    %73 = arith.mulf %72, %72 : vector<256x128xf32>
    %74 = tpu.concatenate %72, %73 in 1 : vector<256x128xf32>, vector<256x128xf32> -> vector<256x256xf32>
    %cst_22 = arith.constant dense<0.000000e+00> : vector<1x256xf32>
    %75 = tpu.matmul %1, %74, %cst_22 {dimension_numbers = #tpu.dot_dimension_numbers<[1], [0], [0], [1], [0, 0, 1, 1], [], []>} : vector<1x256xf32>, vector<256x256xf32>, vector<1x256xf32> -> vector<1x256xf32>
    %76 = vector.extract_strided_slice %75 {offsets = [0, 0], sizes = [1, 128], strides = [1, 1]} : vector<1x256xf32> to vector<1x128xf32>
    %77 = vector.extract_strided_slice %75 {offsets = [0, 128], sizes = [1, 128], strides = [1, 1]} : vector<1x256xf32> to vector<1x128xf32>
    %78 = arith.mulf %76, %76 : vector<1x128xf32>
    %79 = arith.subf %77, %78 : vector<1x128xf32>
    %cst_23 = arith.constant 0.000000e+00 : f32
    %80 = vector.broadcast %cst_23 : f32 to vector<1x128xf32>
    %81 = arith.maximumf %79, %80 : vector<1x128xf32>
    %cst_24 = arith.constant 9.99999974E-6 : f32
    %82 = vector.broadcast %cst_24 : f32 to vector<1x128xf32>
    %83 = arith.addf %81, %82 : vector<1x128xf32>
    %84 = math.rsqrt %83 : vector<1x128xf32>
    %85 = arith.mulf %66, %84 : vector<1x128xf32>
    %86 = arith.mulf %76, %85 : vector<1x128xf32>
    %87 = arith.subf %67, %86 : vector<1x128xf32>
    %88 = vector.broadcast %85 : vector<1x128xf32> to vector<256x128xf32>
    %89 = arith.mulf %72, %88 : vector<256x128xf32>
    %90 = vector.broadcast %87 : vector<1x128xf32> to vector<256x128xf32>
    %91 = arith.addf %89, %90 : vector<256x128xf32>
    %92 = arith.truncf %91 : vector<256x128xf32> to vector<256x128xbf16>
    %c3 = arith.constant 3 : index
    %c0_25 = arith.constant 0 : index
    %c0_26 = arith.constant 0 : index
    %93 = vector.load %arg1[%c3, %c0_25, %c0_26] : memref<4x128x128xbf16, #tpu.memory_space<vmem>>, vector<1x128x128xbf16>
    %94 = vector.shape_cast %93 : vector<1x128x128xbf16> to vector<128x128xbf16>
    %95 = vector.extract_strided_slice %0 {offsets = [9, 0], sizes = [1, 128], strides = [1, 1]} : vector<10x128xf32> to vector<1x128xf32>
    %cst_27 = arith.constant dense<0.000000e+00> : vector<256x128xf32>
    %96 = tpu.matmul %92, %94, %cst_27 {dimension_numbers = #tpu.dot_dimension_numbers<[1], [0], [0], [1], [0, 0, 1, 1], [], []>} : vector<256x128xbf16>, vector<128x128xbf16>, vector<256x128xf32> -> vector<256x128xf32>
    %97 = vector.broadcast %95 : vector<1x128xf32> to vector<256x128xf32>
    %98 = arith.addf %96, %97 : vector<256x128xf32>
    %99 = arith.negf %98 : vector<256x128xf32>
    %100 = math.exp %99 : vector<256x128xf32>
    %cst_28 = arith.constant 1.000000e+00 : f32
    %101 = vector.broadcast %cst_28 : f32 to vector<256x128xf32>
    %102 = arith.addf %101, %100 : vector<256x128xf32>
    %103 = arith.divf %101, %102 : vector<256x128xf32>
    %c0_29 = arith.constant 0 : index
    %c0_30 = arith.constant 0 : index
    %104 = vector.load %arg3[%c0_29, %c0_30] : memref<256x128xf32, #tpu.memory_space<vmem>>, vector<256x128xf32>
    tpu.vector_store %arg3[%c0_29, %c0_30], %103 {strides = array<i32>} : memref<256x128xf32, #tpu.memory_space<vmem>>, vector<256x128xf32>,
    return
  }
}

</mosaic_0001>

<bundles_post_ra>
// kernel: tpu_custom_call.1
= control target key start
LH: loop header
LB: loop body
LE: loop exit
PB: predicated region body
PF: predicated region fallthrough
CT: control target
= control target key end

     0   :  { %8 = vsyncpa [#allocation3], 0  ;;  %s3787_s0 = inlined_call_operand.hbm [shape: bf16[256,128], index: 0, kind: input, shape index: {}]   ;;  %s3788_s1 = inlined_call_operand.hbm [shape: bf16[4,128,128], index: 1, kind: input, shape index: {}]   ;;  %s3789_s2 = inlined_call_operand.hbm [shape: f32[10,128], index: 2, kind: input, shape index: {}]   ;;  %s3790_s3 = inlined_call_operand.hbm [shape: f32[256,128], index: 3, kind: output, shape index: {}]  }
   0x1   :  { %9 = vsyncpa [#allocation6], 0 }
   0x2   :  { %10 = vsyncpa [#allocation4], 0  ;;  %s2911_s12 = smov [#allocation5]   ;;  %s2912_s14 = smov [#allocation2]  }
   0x3   :  { %s28_s13 = sshll.u32 %s2911_s12, 4  ;;  %s16_s15 = sshll.u32 %s2912_s14, 4  ;;  %s29_s13 = int_to_ptr.vmem [resolvable:$true] %s28_s13  ;;  %s2940_s15 = int_to_ptr.vmem [resolvable:$true] %s16_s15 }
   0x4   :  { %s2817_s18 = scalar_lea.hbm %s3788_s1, 4096 }
   0x5   :  { %p2818_p0 = scmp.ne.s32.totalorder %s3788_s1, %s2817_s18  ;;  %p2821_p1 = scmp.lt.u32.totalorder %s2817_s18, %s3788_s1 }
   0x7   :  { %p2823_p2 = pnand %p2821_p1, %p2818_p0 }
   0x9   :  { %2826 = shalt.err (!%p2823_p2)
}
   0xa   :  { %s2827_s23 = scalar_lea.vmem %s29_s13, 4096  ;;  %p2832_p4 = scmp.lt.s32.totalorder %s29_s13, %s29_s13 }
   0xb   :  { %p2828_p3 = scmp.ne.s32.totalorder %s29_s13, %s2827_s23  ;;  %p2833_p5 = scmp.lt.s32.totalorder %s2827_s23, %s2827_s23 }
   0xd   :  { %p2834_p6 = por %p2833_p5, %p2832_p4 }
   0xf   :  { %p2835_p7 = pnand %p2834_p6, %p2828_p3 }
  0x11   :  { %2838 = shalt.err (!%p2835_p7)
}
  0x12   :  { %s2913_s24 = smov 64   ;;  %s2914_s25 = smov 4  }
  0x13   :  { %34 = dma.hbm_to_vmem [thread:$0]  %s3788_s1, 4096, %s29_s13, [#allocation6], %s2913_s24, %s2913_s24, %s2914_s25  }
  0x14   :  { %s2839_s30 = scalar_lea.hbm %s3787_s0, 2048 }
  0x15   :  { %p2840_p8 = scmp.ne.s32.totalorder %s3787_s0, %s2839_s30  ;;  %p2843_p9 = scmp.lt.u32.totalorder %s2839_s30, %s3787_s0 }
  0x17   :  { %p2845_p10 = pnand %p2843_p9, %p2840_p8 }
  0x19   :  { %2848 = shalt.err (!%p2845_p10)
}
  0x1a   :  { %s2849_s8 = scalar_lea.vmem %s2940_s15, 2048  ;;  %p2854_p12 = scmp.lt.s32.totalorder %s2940_s15, %s2940_s15 }
  0x1b   :  { %p2850_p11 = scmp.ne.s32.totalorder %s2940_s15, %s2849_s8  ;;  %p2855_p13 = scmp.lt.s32.totalorder %s2849_s8, %s2849_s8 }
  0x1d   :  { %p2856_p0 = por %p2855_p13, %p2854_p12 }
  0x1f   :  { %p2857_p1 = pnand %p2856_p0, %p2850_p11 }
  0x21   :  { %2860 = shalt.err (!%p2857_p1)
}
  0x22   :  { %22 = dma.hbm_to_vmem [thread:$0]  %s3787_s0, 2048, %s2940_s15, [#allocation3], %s2913_s24, %s2913_s24, %s2914_s25  }
  0x23   :  { %s2915_s10 = smov [#allocation7]   ;;  %s2861_s14 = scalar_lea.hbm %s3789_s2, 256 }
  0x24   :  { %s40_s11 = sshll.u32 %s2915_s10, 4  ;;  %p2862_p2 = scmp.ne.s32.totalorder %s3789_s2, %s2861_s14  ;;  %s41_s11 = int_to_ptr.vmem [resolvable:$true] %s40_s11 }
  0x25   :  { %p2865_p3 = scmp.lt.u32.totalorder %s2861_s14, %s3789_s2 }
  0x27   :  { %p2867_p4 = pnand %p2865_p3, %p2862_p2 }
  0x29   :  { %2870 = shalt.err (!%p2867_p4)
}
  0x2a   :  { %s2871_s20 = scalar_lea.vmem %s41_s11, 256  ;;  %p2876_p6 = scmp.lt.s32.totalorder %s41_s11, %s41_s11 }
  0x2b   :  { %p2872_p5 = scmp.ne.s32.totalorder %s41_s11, %s2871_s20  ;;  %p2877_p7 = scmp.lt.s32.totalorder %s2871_s20, %s2871_s20 }
  0x2d   :  { %p2878_p8 = por %p2877_p7, %p2876_p6 }
  0x2f   :  { %p2879_p9 = pnand %p2878_p8, %p2872_p5 }
  0x31   :  { %2882 = shalt.err (!%p2879_p9)
}
  0x32   :  { %s2916_s0 = smov 128   ;;  %s2917_s15 = smov 8  }
  0x33   :  { %46 = dma.hbm_to_vmem [thread:$0]  %s3789_s2, 256, %s41_s11, [#allocation6], %s2916_s0, %s2916_s0, %s2917_s15  }
  0x34   :  { %2905 = dma.done.wait [#allocation3], 2048  }
  0x35   :  { %2906 = vsyncadd [#allocation3], 4294965248 }
  0x36   :  { %2907 = dma.done.wait [#allocation6], 4352  }
  0x37   :  { %2908 = vsyncadd [#allocation6], 4294962944  ;;  %v2634_v0 = vld [vmem:[#allocation5] sm:$0xff]   ;;  %v2635_v1 = vld [vmem:[#allocation5 + $0x8] sm:$0xff]   ;;  %v2918_v24 = vmov 0.00390625   ;;  %v107_v25 = vlaneseq  ;;  %s2919_s2 = smov [#allocation8]  }
  0x38   :  { %2241 = vmatprep.subr.bf16.mxu1 %v2634_v0  ;;  %v2636_v2 = vld [vmem:[#allocation5 + $0x10] sm:$0xff]   ;;  %v2637_v3 = vld [vmem:[#allocation5 + $0x18] sm:$0xff]   ;;  %v2642_v4 = vld [vmem:[#allocation2] sm:$0xff]   ;;  %s2052_s23 = sshll.u32 %s2919_s2, 4  ;;  %s2053_s23 = int_to_ptr.vmem [resolvable:$true] %s2052_s23 }
  0x39   :  { %2242 = vmatpush3.bf16.msra.mxu1 %v2634_v0  ;;  %2257 = vmatprep.mubr.bf16.mxu1 %v2642_v4  ;;  %v2638_v5 = vld [vmem:[#allocation5 + $0x20] sm:$0xff]   ;;  %v2639_v6 = vld [vmem:[#allocation5 + $0x28] sm:$0xff]   ;;  %v2640_v7 = vld [vmem:[#allocation5 + $0x30] sm:$0xff]   ;;  %v2987_v26 = vshrl.u32 %v107_v25, 7  ;;  %s2883_s24 = scalar_lea.vmem %s2053_s23, 4096  ;;  %p2888_p11 = scmp.lt.s32.totalorder %s2053_s23, %s2053_s23 }
  0x3a   :  { %2243 = vmatprep.subr.bf16.mxu1 %v2635_v1  ;;  %v2641_v8 = vld [vmem:[#allocation5 + $0x38] sm:$0xff]   ;;  %v2643_v9 = vld [vmem:[#allocation2 + $0x8] sm:$0xff]   ;;  %v2644_v10 = vld [vmem:[#allocation2 + $0x10] sm:$0xff]   ;;  %p2884_p10 = scmp.ne.s32.totalorder %s2053_s23, %s2883_s24  ;;  %p2889_p12 = scmp.lt.s32.totalorder %s2883_s24, %s2883_s24 }
  0x3b   :  { %v2645_v11 = vld [vmem:[#allocation2 + $0x18] sm:$0xff]   ;;  %v2646_v12 = vld [vmem:[#allocation2 + $0x20] sm:$0xff]   ;;  %v2647_v13 = vld [vmem:[#allocation2 + $0x28] sm:$0xff]   ;;  %v109_v27 = vsub.s32 0, %v2987_v26 }
  0x3c   :  { %v2648_v14 = vld [vmem:[#allocation2 + $0x30] sm:$0xff]   ;;  %v2649_v15 = vld [vmem:[#allocation2 + $0x38] sm:$0xff]   ;;  %v2650_v16 = vld [vmem:[#allocation2 + $0x40] sm:$0xff]   ;;  %p2890_p13 = por %p2889_p12, %p2888_p11 }
  0x3d   :  { %2244 = vmatpush3.bf16.msra.mxu1 %v2635_v1  ;;  %v2651_v17 = vld [vmem:[#allocation2 + $0x48] sm:$0xff]   ;;  %v2652_v18 = vld [vmem:[#allocation2 + $0x50] sm:$0xff]   ;;  %v2653_v19 = vld [vmem:[#allocation2 + $0x58] sm:$0xff]  }
  0x3e   :  { %2245 = vmatprep.subr.bf16.mxu1 %v2636_v2  ;;  %v2654_v20 = vld [vmem:[#allocation2 + $0x60] sm:$0xff]   ;;  %v2655_v21 = vld [vmem:[#allocation2 + $0x68] sm:$0xff]   ;;  %v2656_v22 = vld [vmem:[#allocation2 + $0x70] sm:$0xff]   ;;  %p2891_p0 = pnand %p2890_p13, %p2884_p10 }
  0x3f   :  { %v2657_v23 = vld [vmem:[#allocation2 + $0x78] sm:$0xff]   ;;  %v2990_v28 = vld [vmem:[#allocation7] sm:$0xff] }
  0x40   :  { %v2995_v29 = vrot.slane %v2990_v28, %v109_v27 }
  0x41   :  { %2246 = vmatpush3.bf16.msra.mxu1 %v2636_v2 }
  0x42   :  { %2247 = vmatprep.subr.bf16.mxu1 %v2637_v3 }
  0x45   :  { %2248 = vmatpush3.bf16.msra.mxu1 %v2637_v3 }
  0x46   :  { %2249 = vmatprep.subr.bf16.mxu1 %v2638_v5 }
  0x49   :  { %2250 = vmatpush3.bf16.msra.mxu1 %v2638_v5 }
  0x4a   :  { %2251 = vmatprep.subr.bf16.mxu1 %v2639_v6 }
  0x4d   :  { %2252 = vmatpush3.bf16.msra.mxu1 %v2639_v6 }
  0x4e   :  { %2253 = vmatprep.subr.bf16.mxu1 %v2640_v7 }
  0x51   :  { %2254 = vmatpush3.bf16.msra.mxu1 %v2640_v7 }
  0x52   :  { %2255 = vmatprep.subr.bf16.mxu1 %v2641_v8 }
  0x55   :  { %2256 = vmatpush3.bf16.msra.mxu1 %v2641_v8 }
  0x58   :  { %2258 = vmatmul.mubr.bf16.vlgmr.msra.gmra.mrb[0].mxu1 %v2643_v9 }
  0x59   :  { %2261 = vmatprep.mubr.bf16.mxu1 %v2644_v10 }
  0x60   :  { %2262 = vmatmul.mubr.bf16.gmra.mrb[4].mxu1 %v2645_v11 }
  0x61   :  { %2265 = vmatprep.mubr.bf16.mxu1 %v2646_v12 }
  0x68   :  { %2266 = vmatmul.mubr.bf16.gmra.mrb[8].mxu1 %v2647_v13 }
  0x69   :  { %2269 = vmatprep.mubr.bf16.mxu1 %v2648_v14 }
  0x70   :  { %2270 = vmatmul.mubr.bf16.gmra.mrb[12].mxu1 %v2649_v15 }
  0x71   :  { %2273 = vmatprep.mubr.bf16.mxu1 %v2650_v16 }
  0x78   :  { %2274 = vmatmul.mubr.bf16.gmra.mrb[16].mxu1 %v2651_v17 }
  0x79   :  { %2277 = vmatprep.mubr.bf16.mxu1 %v2652_v18 }
  0x80   :  { %2278 = vmatmul.mubr.bf16.gmra.mrb[20].mxu1 %v2653_v19 }
  0x81   :  { %2281 = vmatprep.mubr.bf16.mxu1 %v2654_v20 }
  0x88   :  { %2282 = vmatmul.mubr.bf16.gmra.mrb[24].mxu1 %v2655_v21 }
  0x89   :  { %2285 = vmatprep.mubr.bf16.mxu1 %v2656_v22 }
  0x90   :  { %2286 = vmatmul.mubr.bf16.gmra.mrb[28].mxu1 %v2657_v23 }
  0x91   :  { %544 = vmatprep.mubr.f32.mxu1 %v2918_v24 }
 0x12b   :  { %v2259_v30 = vpop.f32.mrb[0].mxu1 }
 0x12c   :  { %v289_v31 = vpop.f32.mrb[1].mxu1  ;;  %v298_v32 = vadd.f32 %v2259_v30, %v2995_v29 }
 0x12d   :  { %v290_v33 = vadd.f32 %v289_v31, %v2995_v29  ;;  %v2260_v34 = vpop.f32.mrb[2].mxu1 }
 0x12e   :  { %v301_v35 = vadd.f32 %v2260_v34, %v2995_v29  ;;  %v292_v36 = vpop.f32.mrb[3].mxu1  ;;  %v3005_v40 = vmax.f32 %v298_v32, 0.0 }
 0x12f   :  { %v3000_v37 = vmax.f32 %v290_v33, 0.0  ;;  %v293_v38 = vadd.f32 %v292_v36, %v2995_v29 }
 0x130   :  { %v3003_v39 = vmax.f32 %v301_v35, 0.0  ;;  %v450_v47 = vmul.f32 %v3005_v40, %v3005_v40 }
 0x131   :  { %v3007_v41 = vmax.f32 %v293_v38, 0.0  ;;  %v448_v42 = vmul.f32 %v3000_v37, %v3000_v37 }
 0x132   :  { %v451_v43 = vmul.f32 %v3003_v39, %v3003_v39  ;;  %v2439_v61 = vpack.c.bf16 %v3003_v39, %v3005_v40 }
 0x133   :  { %v449_v44 = vmul.f32 %v3007_v41, %v3007_v41  ;;  %v2263_v45 = vpop.f32.mrb[4].mxu1  ;;  %v2435_v52 = vpack.c.bf16 %v3007_v41, %v3000_v37 }
 0x134   :  { %v305_v46 = vpop.f32.mrb[5].mxu1  ;;  %v314_v48 = vadd.f32 %v2263_v45, %v2995_v29  ;;  %v2437_v57 = vpack.c.bf16 %v451_v43, %v450_v47 }
 0x135   :  { %v306_v49 = vadd.f32 %v305_v46, %v2995_v29  ;;  %v2264_v50 = vpop.f32.mrb[6].mxu1  ;;  %v2433_v51 = vpack.c.bf16 %v449_v44, %v448_v42 }
 0x136   :  { %v317_v53 = vadd.f32 %v2264_v50, %v2995_v29  ;;  %v308_v54 = vpop.f32.mrb[7].mxu1  ;;  %v3027_v59 = vmax.f32 %v314_v48, 0.0 }
 0x137   :  { %v3022_v55 = vmax.f32 %v306_v49, 0.0  ;;  %v309_v56 = vadd.f32 %v308_v54, %v2995_v29  ;;  %2434 = vmatprep.subr.bf16.mxu1 %v2433_v51 }
 0x138   :  { %v3025_v58 = vmax.f32 %v317_v53, 0.0  ;;  %2436 = vmatpush1.bf16.msra.mxu1 %v2435_v52  ;;  %v454_v3 = vmul.f32 %v3027_v59, %v3027_v59 }
 0x139   :  { %v3029_v60 = vmax.f32 %v309_v56, 0.0  ;;  %2438 = vmatprep.subr.bf16.mxu1 %v2437_v57  ;;  %v452_v62 = vmul.f32 %v3022_v55, %v3022_v55 }
 0x13a   :  { %v455_v63 = vmul.f32 %v3025_v58, %v3025_v58  ;;  %v2447_v17 = vpack.c.bf16 %v3025_v58, %v3027_v59 }
 0x13b   :  { %v453_v0 = vmul.f32 %v3029_v60, %v3029_v60  ;;  %v2267_v1 = vpop.f32.mrb[8].mxu1  ;;  %v2443_v8 = vpack.c.bf16 %v3029_v60, %v3022_v55 }
 0x13c   :  { %v321_v2 = vpop.f32.mrb[9].mxu1  ;;  %2440 = vmatpush1.bf16.msra.mxu1 %v2439_v61  ;;  %v330_v4 = vadd.f32 %v2267_v1, %v2995_v29  ;;  %v2445_v13 = vpack.c.bf16 %v455_v63, %v454_v3 }
 0x13d   :  { %v322_v5 = vadd.f32 %v321_v2, %v2995_v29  ;;  %v2268_v6 = vpop.f32.mrb[10].mxu1  ;;  %v2441_v7 = vpack.c.bf16 %v453_v0, %v452_v62 }
 0x13e   :  { %v333_v9 = vadd.f32 %v2268_v6, %v2995_v29  ;;  %v324_v10 = vpop.f32.mrb[11].mxu1  ;;  %v3051_v15 = vmax.f32 %v330_v4, 0.0 }
 0x13f   :  { %v3046_v11 = vmax.f32 %v322_v5, 0.0  ;;  %v325_v12 = vadd.f32 %v324_v10, %v2995_v29  ;;  %2442 = vmatprep.subr.bf16.mxu1 %v2441_v7 }
 0x140   :  { %v3049_v14 = vmax.f32 %v333_v9, 0.0  ;;  %2444 = vmatpush1.bf16.msra.mxu1 %v2443_v8  ;;  %v458_v23 = vmul.f32 %v3051_v15, %v3051_v15 }
 0x141   :  { %v3053_v16 = vmax.f32 %v325_v12, 0.0  ;;  %2446 = vmatprep.subr.bf16.mxu1 %v2445_v13  ;;  %v456_v18 = vmul.f32 %v3046_v11, %v3046_v11 }
 0x142   :  { %v459_v19 = vmul.f32 %v3049_v14, %v3049_v14  ;;  %v2455_v46 = vpack.c.bf16 %v3049_v14, %v3051_v15 }
 0x143   :  { %v457_v20 = vmul.f32 %v3053_v16, %v3053_v16  ;;  %v2271_v21 = vpop.f32.mrb[12].mxu1  ;;  %v2451_v33 = vpack.c.bf16 %v3053_v16, %v3046_v11 }
 0x144   :  { %v337_v22 = vpop.f32.mrb[13].mxu1  ;;  %2448 = vmatpush1.bf16.msra.mxu1 %v2447_v17  ;;  %v346_v25 = vadd.f32 %v2271_v21, %v2995_v29  ;;  %v2453_v42 = vpack.c.bf16 %v459_v19, %v458_v23 }
 0x145   :  { %v338_v30 = vadd.f32 %v337_v22, %v2995_v29  ;;  %v2272_v31 = vpop.f32.mrb[14].mxu1  ;;  %v2449_v32 = vpack.c.bf16 %v457_v20, %v456_v18 }
 0x146   :  { %v349_v34 = vadd.f32 %v2272_v31, %v2995_v29  ;;  %v340_v35 = vpop.f32.mrb[15].mxu1  ;;  %v3075_v44 = vmax.f32 %v346_v25, 0.0 }
 0x147   :  { %v3070_v36 = vmax.f32 %v338_v30, 0.0  ;;  %v341_v38 = vadd.f32 %v340_v35, %v2995_v29  ;;  %2450 = vmatprep.subr.bf16.mxu1 %v2449_v32 }
 0x148   :  { %v3073_v43 = vmax.f32 %v349_v34, 0.0  ;;  %2452 = vmatpush1.bf16.msra.mxu1 %v2451_v33  ;;  %v462_v52 = vmul.f32 %v3075_v44, %v3075_v44 }
 0x149   :  { %v3077_v45 = vmax.f32 %v341_v38, 0.0  ;;  %2454 = vmatprep.subr.bf16.mxu1 %v2453_v42  ;;  %v460_v47 = vmul.f32 %v3070_v36, %v3070_v36 }
 0x14a   :  { %v463_v48 = vmul.f32 %v3073_v43, %v3073_v43  ;;  %v2463_v6 = vpack.c.bf16 %v3073_v43, %v3075_v44 }
 0x14b   :  { %v461_v49 = vmul.f32 %v3077_v45, %v3077_v45  ;;  %v2275_v50 = vpop.f32.mrb[16].mxu1  ;;  %v2459_v61 = vpack.c.bf16 %v3077_v45, %v3070_v36 }
 0x14c   :  { %v353_v51 = vpop.f32.mrb[17].mxu1  ;;  %2456 = vmatpush1.bf16.msra.mxu1 %v2455_v46  ;;  %v362_v53 = vadd.f32 %v2275_v50, %v2995_v29  ;;  %v2461_v2 = vpack.c.bf16 %v463_v48, %v462_v52 }
 0x14d   :  { %v354_v54 = vadd.f32 %v353_v51, %v2995_v29  ;;  %v2276_v56 = vpop.f32.mrb[18].mxu1  ;;  %v2457_v57 = vpack.c.bf16 %v461_v49, %v460_v47 }
 0x14e   :  { %v365_v62 = vadd.f32 %v2276_v56, %v2995_v29  ;;  %v356_v63 = vpop.f32.mrb[19].mxu1  ;;  %v3099_v4 = vmax.f32 %v362_v53, 0.0 }
 0x14f   :  { %v3094_v0 = vmax.f32 %v354_v54, 0.0  ;;  %v357_v1 = vadd.f32 %v356_v63, %v2995_v29  ;;  %2458 = vmatprep.subr.bf16.mxu1 %v2457_v57 }
 0x150   :  { %v3097_v3 = vmax.f32 %v365_v62, 0.0  ;;  %2460 = vmatpush1.bf16.msra.mxu1 %v2459_v61  ;;  %v466_v13 = vmul.f32 %v3099_v4, %v3099_v4 }
 0x151   :  { %v3101_v5 = vmax.f32 %v357_v1, 0.0  ;;  %2462 = vmatprep.subr.bf16.mxu1 %v2461_v2  ;;  %v464_v7 = vmul.f32 %v3094_v0, %v3094_v0 }
 0x152   :  { %v467_v8 = vmul.f32 %v3097_v3, %v3097_v3  ;;  %v2471_v35 = vpack.c.bf16 %v3097_v3, %v3099_v4 }
 0x153   :  { %v465_v9 = vmul.f32 %v3101_v5, %v3101_v5  ;;  %v2279_v10 = vpop.f32.mrb[20].mxu1  ;;  %v2467_v21 = vpack.c.bf16 %v3101_v5, %v3094_v0 }
 0x154   :  { %v369_v12 = vpop.f32.mrb[21].mxu1  ;;  %2464 = vmatpush1.bf16.msra.mxu1 %v2463_v6  ;;  %v378_v17 = vadd.f32 %v2279_v10, %v2995_v29  ;;  %v2469_v31 = vpack.c.bf16 %v467_v8, %v466_v13 }
 0x155   :  { %v370_v18 = vadd.f32 %v369_v12, %v2995_v29  ;;  %v2280_v19 = vpop.f32.mrb[22].mxu1  ;;  %v2465_v20 = vpack.c.bf16 %v465_v9, %v464_v7 }
 0x156   :  { %v381_v22 = vadd.f32 %v2280_v19, %v2995_v29  ;;  %v372_v23 = vpop.f32.mrb[23].mxu1  ;;  %v3123_v33 = vmax.f32 %v378_v17, 0.0 }
 0x157   :  { %v3118_v25 = vmax.f32 %v370_v18, 0.0  ;;  %v373_v30 = vadd.f32 %v372_v23, %v2995_v29  ;;  %2466 = vmatprep.subr.bf16.mxu1 %v2465_v20 }
 0x158   :  { %v3121_v32 = vmax.f32 %v381_v22, 0.0  ;;  %2468 = vmatpush1.bf16.msra.mxu1 %v2467_v21  ;;  %v470_v49 = vmul.f32 %v3123_v33, %v3123_v33 }
 0x159   :  { %v3125_v34 = vmax.f32 %v373_v30, 0.0  ;;  %2470 = vmatprep.subr.bf16.mxu1 %v2469_v31  ;;  %v468_v38 = vmul.f32 %v3118_v25, %v3118_v25 }
 0x15a   :  { %v471_v42 = vmul.f32 %v3121_v32, %v3121_v32  ;;  %v2479_v7 = vpack.c.bf16 %v3121_v32, %v3123_v33 }
 0x15b   :  { %v469_v46 = vmul.f32 %v3125_v34, %v3125_v34  ;;  %v2283_v47 = vpop.f32.mrb[24].mxu1  ;;  %v2475_v54 = vpack.c.bf16 %v3125_v34, %v3118_v25 }
 0x15c   :  { %v385_v48 = vpop.f32.mrb[25].mxu1  ;;  %2472 = vmatpush1.bf16.msra.mxu1 %v2471_v35  ;;  %v394_v50 = vadd.f32 %v2283_v47, %v2995_v29  ;;  %v2477_v63 = vpack.c.bf16 %v471_v42, %v470_v49 }
 0x15d   :  { %v386_v51 = vadd.f32 %v385_v48, %v2995_v29  ;;  %v2284_v52 = vpop.f32.mrb[26].mxu1  ;;  %v2473_v53 = vpack.c.bf16 %v469_v46, %v468_v38 }
 0x15e   :  { %v397_v56 = vadd.f32 %v2284_v52, %v2995_v29  ;;  %v388_v57 = vpop.f32.mrb[27].mxu1  ;;  %v3147_v2 = vmax.f32 %v394_v50, 0.0 }
 0x15f   :  { %v3142_v61 = vmax.f32 %v386_v51, 0.0  ;;  %v389_v62 = vadd.f32 %v388_v57, %v2995_v29  ;;  %2474 = vmatprep.subr.bf16.mxu1 %v2473_v53  ;;  %v2658_v57 = vld [vmem:[#allocation5 + $0x40] sm:$0xff]  }
 0x160   :  { %v3145_v1 = vmax.f32 %v397_v56, 0.0  ;;  %2476 = vmatpush1.bf16.msra.mxu1 %v2475_v54  ;;  %v474_v17 = vmul.f32 %v3147_v2, %v3147_v2  ;;  %2289 = vmatprep.subr.bf16.mxu0 %v2658_v57 }
 0x161   :  { %v3149_v6 = vmax.f32 %v389_v62, 0.0  ;;  %2478 = vmatprep.subr.bf16.mxu1 %v2477_v63  ;;  %v472_v8 = vmul.f32 %v3142_v61, %v3142_v61  ;;  %2290 = vmatpush3.bf16.msra.mxu0 %v2658_v57  ;;  %v2659_v62 = vld [vmem:[#allocation5 + $0x48] sm:$0xff]   ;;  %v2660_v63 = vld [vmem:[#allocation5 + $0x50] sm:$0xff]  }
 0x162   :  { %v475_v9 = vmul.f32 %v3145_v1, %v3145_v1  ;;  %v2487_v48 = vpack.c.bf16 %v3145_v1, %v3147_v2  ;;  %2291 = vmatprep.subr.bf16.mxu0 %v2659_v62 }
 0x163   :  { %v473_v10 = vmul.f32 %v3149_v6, %v3149_v6  ;;  %v2287_v12 = vpop.f32.mrb[28].mxu1  ;;  %v2483_v22 = vpack.c.bf16 %v3149_v6, %v3142_v61 }
 0x164   :  { %v401_v13 = vpop.f32.mrb[29].mxu1  ;;  %2480 = vmatpush1.bf16.msra.mxu1 %v2479_v7  ;;  %v410_v18 = vadd.f32 %v2287_v12, %v2995_v29  ;;  %v2485_v38 = vpack.c.bf16 %v475_v9, %v474_v17  ;;  %v2661_v7 = vld [vmem:[#allocation5 + $0x58] sm:$0xff]   ;;  %v2663_v9 = vld [vmem:[#allocation5 + $0x68] sm:$0xff]  }
 0x165   :  { %v402_v19 = vadd.f32 %v401_v13, %v2995_v29  ;;  %v2288_v20 = vpop.f32.mrb[30].mxu1  ;;  %v2481_v21 = vpack.c.bf16 %v473_v10, %v472_v8  ;;  %2292 = vmatpush3.bf16.msra.mxu0 %v2659_v62  ;;  %v2662_v8 = vld [vmem:[#allocation5 + $0x60] sm:$0xff]   ;;  %v2664_v10 = vld [vmem:[#allocation5 + $0x70] sm:$0xff]   ;;  %v2665_v12 = vld [vmem:[#allocation5 + $0x78] sm:$0xff]  }
 0x166   :  { %v413_v23 = vadd.f32 %v2288_v20, %v2995_v29  ;;  %v404_v30 = vpop.f32.mrb[31].mxu1  ;;  %v3171_v46 = vmax.f32 %v410_v18, 0.0  ;;  %2293 = vmatprep.subr.bf16.mxu0 %v2660_v63 }
 0x167   :  { %v3166_v31 = vmax.f32 %v402_v19, 0.0  ;;  %v405_v35 = vadd.f32 %v404_v30, %v2995_v29  ;;  %2482 = vmatprep.subr.bf16.mxu1 %v2481_v21  ;;  %v570_v30 = vsub.s32 1, %v2987_v26 }
 0x168   :  { %v3169_v42 = vmax.f32 %v413_v23, 0.0  ;;  %2484 = vmatpush1.bf16.msra.mxu1 %v2483_v22  ;;  %v478_v51 = vmul.f32 %v3171_v46, %v3171_v46 }
 0x169   :  { %v3173_v47 = vmax.f32 %v405_v35, 0.0  ;;  %2486 = vmatprep.subr.bf16.mxu1 %v2485_v38  ;;  %v476_v49 = vmul.f32 %v3166_v31, %v3166_v31  ;;  %2294 = vmatpush3.bf16.msra.mxu0 %v2660_v63 }
 0x16a   :  { %v479_v50 = vmul.f32 %v3169_v42, %v3169_v42  ;;  %v2495_v56 = vpack.c.bf16 %v3169_v42, %v3171_v46  ;;  %2295 = vmatprep.subr.bf16.mxu0 %v2661_v7 }
 0x16b   :  { %v477_v29 = vmul.f32 %v3173_v47, %v3173_v47  ;;  %v2491_v53 = vpack.c.bf16 %v3173_v47, %v3166_v31 }
 0x16c   :  { %2488 = vmatpush1.bf16.msra.mxu1 %v2487_v48  ;;  %v2493_v54 = vpack.c.bf16 %v479_v50, %v478_v51 }
 0x16d   :  { %v2489_v52 = vpack.c.bf16 %v477_v29, %v476_v49  ;;  %2296 = vmatpush3.bf16.msra.mxu0 %v2661_v7  ;;  %v606_v49 = vsub.s32 2, %v2987_v26 }
 0x16e   :  { %2297 = vmatprep.subr.bf16.mxu0 %v2662_v8 }
 0x16f   :  { %2490 = vmatprep.subr.bf16.mxu1 %v2489_v52 }
 0x170   :  { %2492 = vmatpush1.bf16.msra.mxu1 %v2491_v53 }
 0x171   :  { %2494 = vmatprep.subr.bf16.mxu1 %v2493_v54  ;;  %2298 = vmatpush3.bf16.msra.mxu0 %v2662_v8 }
 0x172   :  { %2299 = vmatprep.subr.bf16.mxu0 %v2663_v9 }
 0x174   :  { %2496 = vmatpush1.bf16.msra.mxu1 %v2495_v56 }
 0x175   :  { %2300 = vmatpush3.bf16.msra.mxu0 %v2663_v9 }
 0x176   :  { %2301 = vmatprep.subr.bf16.mxu0 %v2664_v10 }
 0x177   :  { %545 = vmatmul.mubr.f32.vlgmr.msra.gmra.mrb[32].mxu1 %v2918_v24 }
 0x178   :  { %1014 = vmatprep.mubr.f32.mxu1 %v2918_v24 }
 0x179   :  { %2302 = vmatpush3.bf16.msra.mxu0 %v2664_v10 }
 0x17a   :  { %2303 = vmatprep.subr.bf16.mxu0 %v2665_v12 }
 0x17d   :  { %2304 = vmatpush3.bf16.msra.mxu0 %v2665_v12 }
 0x24a   :  { %v546_v13 = vpop.f32.mrb[32].mxu1 }
 0x24b   :  { %v551_v17 = vmul.f32 %v546_v13, %v546_v13  ;;  %v548_v18 = vpop.f32.mrb[33].mxu1 }
 0x24d   :  { %v552_v19 = vsub.f32 %v548_v18, %v551_v17 }
 0x24f   :  { %v553_v20 = vmax.f32 %v552_v19, 0.0 }
 0x251   :  { %v554_v21 = vadd.f32 1e-05, %v553_v20 }
 0x253   :  { %2682 = vrsqrt.f32 %v554_v21 }
 0x25d   :  { %v2683_v22 = vpop.eup %2682 }
 0x25e   :  { %v557_v23 = vrot.slane %v2683_v22, 7 }
 0x260   :  { %v559_v35 = vmul.f32 %v557_v23, %v2990_v28 }
 0x262   :  { %v561_v38 = vrot.slane %v559_v35, 1  ;;  %v571_v48 = vrot.slane %v559_v35, %v570_v30 }
 0x264   :  { %v563_v50 = vmul.f32 %v561_v38, %v546_v13  ;;  %v574_v29 = vmul.f32 %v571_v48, %v3005_v40  ;;  %v575_v51 = vmul.f32 %v571_v48, %v3003_v39  ;;  %v576_v52 = vmul.f32 %v571_v48, %v3022_v55 }
 0x265   :  { %v577_v53 = vmul.f32 %v571_v48, %v3029_v60  ;;  %v578_v54 = vmul.f32 %v571_v48, %v3027_v59  ;;  %v579_v56 = vmul.f32 %v571_v48, %v3025_v58  ;;  %v580_v57 = vmul.f32 %v571_v48, %v3046_v11 }
 0x266   :  { %v565_v62 = vrot.slane %v563_v50, 6  ;;  %v581_v63 = vmul.f32 %v571_v48, %v3053_v16  ;;  %v582_v7 = vmul.f32 %v571_v48, %v3051_v15  ;;  %v583_v8 = vmul.f32 %v571_v48, %v3049_v14 }
 0x267   :  { %v584_v40 = vmul.f32 %v571_v48, %v3070_v36  ;;  %v585_v39 = vmul.f32 %v571_v48, %v3077_v45  ;;  %v586_v55 = vmul.f32 %v571_v48, %v3075_v44  ;;  %v587_v60 = vmul.f32 %v571_v48, %v3073_v43 }
 0x268   :  { %v567_v59 = vsub.f32 %v2990_v28, %v565_v62  ;;  %v588_v58 = vmul.f32 %v571_v48, %v3094_v0  ;;  %v589_v11 = vmul.f32 %v571_v48, %v3101_v5  ;;  %v590_v16 = vmul.f32 %v571_v48, %v3099_v4 }
 0x269   :  { %v591_v15 = vmul.f32 %v571_v48, %v3097_v3  ;;  %v592_v14 = vmul.f32 %v571_v48, %v3118_v25  ;;  %v593_v36 = vmul.f32 %v571_v48, %v3125_v34  ;;  %v594_v45 = vmul.f32 %v571_v48, %v3123_v33 }
 0x26a   :  { %v607_v9 = vrot.slane %v567_v59, %v606_v49  ;;  %v595_v44 = vmul.f32 %v571_v48, %v3121_v32  ;;  %v596_v43 = vmul.f32 %v571_v48, %v3142_v61  ;;  %v597_v10 = vmul.f32 %v571_v48, %v3149_v6 }
 0x26b   :  { %v598_v0 = vmul.f32 %v571_v48, %v3147_v2  ;;  %v599_v5 = vmul.f32 %v571_v48, %v3145_v1  ;;  %v600_v4 = vmul.f32 %v571_v48, %v3166_v31  ;;  %v601_v3 = vmul.f32 %v571_v48, %v3173_v47 }
 0x26c   :  { %v602_v25 = vmul.f32 %v571_v48, %v3171_v46  ;;  %v603_v34 = vmul.f32 %v571_v48, %v3169_v42  ;;  %v572_v33 = vmul.f32 %v571_v48, %v3000_v37  ;;  %v573_v32 = vmul.f32 %v571_v48, %v3007_v41 }
 0x26d   :  { %v610_v12 = vadd.f32 %v607_v9, %v574_v29  ;;  %v611_v61 = vadd.f32 %v607_v9, %v575_v51  ;;  %v612_v13 = vadd.f32 %v607_v9, %v576_v52  ;;  %v613_v6 = vadd.f32 %v607_v9, %v577_v53 }
 0x26e   :  { %v608_v17 = vadd.f32 %v607_v9, %v572_v33  ;;  %v609_v2 = vadd.f32 %v607_v9, %v573_v32  ;;  %v614_v18 = vadd.f32 %v607_v9, %v578_v54  ;;  %v615_v1 = vadd.f32 %v607_v9, %v579_v56 }
 0x26f   :  { %v641_v19 = vpack.c.bf16 %v611_v61, %v610_v12  ;;  %v642_v31 = vpack.c.bf16 %v613_v6, %v612_v13  ;;  %v616_v20 = vadd.f32 %v607_v9, %v580_v57  ;;  %v617_v47 = vadd.f32 %v607_v9, %v581_v63 }
 0x270   :  { %v640_v21 = vpack.c.bf16 %v609_v2, %v608_v17  ;;  %v643_v46 = vpack.c.bf16 %v615_v1, %v614_v18  ;;  %v618_v22 = vadd.f32 %v607_v9, %v582_v7  ;;  %v619_v42 = vadd.f32 %v607_v9, %v583_v8 }
 0x271   :  { %v644_v23 = vpack.c.bf16 %v617_v47, %v616_v20  ;;  %v620_v37 = vadd.f32 %v607_v9, %v584_v40  ;;  %v621_v35 = vadd.f32 %v607_v9, %v585_v39  ;;  %v622_v41 = vadd.f32 %v607_v9, %v586_v55 }
 0x272   :  { %2305 = vmatprep.mubr.bf16.mxu0 %v640_v21  ;;  %v645_v38 = vpack.c.bf16 %v619_v42, %v618_v22  ;;  %v623_v48 = vadd.f32 %v607_v9, %v587_v60  ;;  %v624_v49 = vadd.f32 %v607_v9, %v588_v58  ;;  %v625_v50 = vadd.f32 %v607_v9, %v589_v11 }
 0x273   :  { %2306 = vmatmul.mubr.bf16.vlgmr.msra.gmra.mrb[0].mxu0 %v641_v19  ;;  %v646_v29 = vpack.c.bf16 %v621_v35, %v620_v37  ;;  %v626_v51 = vadd.f32 %v607_v9, %v590_v16  ;;  %v627_v52 = vadd.f32 %v607_v9, %v591_v15  ;;  %v628_v53 = vadd.f32 %v607_v9, %v592_v14 }
 0x274   :  { %2309 = vmatprep.mubr.bf16.mxu0 %v642_v31  ;;  %v647_v54 = vpack.c.bf16 %v623_v48, %v622_v41  ;;  %v648_v56 = vpack.c.bf16 %v625_v50, %v624_v49  ;;  %v629_v57 = vadd.f32 %v607_v9, %v593_v36  ;;  %v630_v62 = vadd.f32 %v607_v9, %v594_v45  ;;  %v2666_v36 = vld [vmem:[#allocation5 + $0x80] sm:$0xff]   ;;  %v2667_v45 = vld [vmem:[#allocation5 + $0x88] sm:$0xff]  }
 0x275   :  { %v649_v63 = vpack.c.bf16 %v627_v52, %v626_v51  ;;  %v631_v7 = vadd.f32 %v607_v9, %v595_v44  ;;  %v632_v8 = vadd.f32 %v607_v9, %v596_v43  ;;  %v633_v40 = vadd.f32 %v607_v9, %v597_v10  ;;  %2337 = vmatprep.subr.bf16.mxu0 %v2666_v36  ;;  %v2669_v44 = vld [vmem:[#allocation5 + $0x98] sm:$0xff]  }
 0x276   :  { %v650_v39 = vpack.c.bf16 %v629_v57, %v628_v53  ;;  %v634_v55 = vadd.f32 %v607_v9, %v598_v0  ;;  %v635_v59 = vadd.f32 %v607_v9, %v599_v5  ;;  %v636_v60 = vadd.f32 %v607_v9, %v600_v4  ;;  %2338 = vmatpush3.bf16.msra.mxu0 %v2666_v36 }
 0x277   :  { %v651_v58 = vpack.c.bf16 %v631_v7, %v630_v62  ;;  %v652_v11 = vpack.c.bf16 %v633_v40, %v632_v8  ;;  %v637_v33 = vadd.f32 %v607_v9, %v601_v3  ;;  %v638_v32 = vadd.f32 %v607_v9, %v602_v25  ;;  %2339 = vmatprep.subr.bf16.mxu0 %v2667_v45 }
 0x278   :  { %v653_v16 = vpack.c.bf16 %v635_v59, %v634_v55  ;;  %v639_v15 = vadd.f32 %v607_v9, %v603_v34  ;;  %v2668_v9 = vld [vmem:[#allocation5 + $0x90] sm:$0xff]   ;;  %v675_v43 = vsub.s32 3, %v2987_v26 }
 0x279   :  { %v654_v14 = vpack.c.bf16 %v637_v33, %v636_v60 }
 0x27a   :  { %v655_v12 = vpack.c.bf16 %v639_v15, %v638_v32  ;;  %2340 = vmatpush3.bf16.msra.mxu0 %v2667_v45  ;;  %v3231_v10 = vrot.slane %v2990_v28, %v675_v43 }
 0x27b   :  { %2310 = vmatmul.mubr.bf16.gmra.mrb[4].mxu0 %v643_v46  ;;  %2341 = vmatprep.subr.bf16.mxu0 %v2668_v9 }
 0x27c   :  { %2313 = vmatprep.mubr.bf16.mxu0 %v644_v23 }
 0x27e   :  { %2342 = vmatpush3.bf16.msra.mxu0 %v2668_v9 }
 0x27f   :  { %2343 = vmatprep.subr.bf16.mxu0 %v2669_v44 }
 0x282   :  { %2344 = vmatpush3.bf16.msra.mxu0 %v2669_v44 }
 0x283   :  { %2314 = vmatmul.mubr.bf16.gmra.mrb[8].mxu0 %v645_v38 }
 0x284   :  { %2317 = vmatprep.mubr.bf16.mxu0 %v646_v29 }
 0x28b   :  { %2318 = vmatmul.mubr.bf16.gmra.mrb[12].mxu0 %v647_v54 }
 0x28c   :  { %2321 = vmatprep.mubr.bf16.mxu0 %v648_v56 }
 0x293   :  { %2322 = vmatmul.mubr.bf16.gmra.mrb[16].mxu0 %v649_v63 }
 0x294   :  { %2325 = vmatprep.mubr.bf16.mxu0 %v650_v39 }
 0x29b   :  { %2326 = vmatmul.mubr.bf16.gmra.mrb[20].mxu0 %v651_v58 }
 0x29c   :  { %2329 = vmatprep.mubr.bf16.mxu0 %v652_v11 }
 0x2a3   :  { %2330 = vmatmul.mubr.bf16.gmra.mrb[24].mxu0 %v653_v16 }
 0x2a4   :  { %2333 = vmatprep.mubr.bf16.mxu0 %v654_v14 }
 0x2ab   :  { %2334 = vmatmul.mubr.bf16.gmra.mrb[28].mxu0 %v655_v12 }
 0x346   :  { %v2307_v0 = vpop.f32.mrb[0].mxu0 }
 0x347   :  { %v759_v5 = vpop.f32.mrb[1].mxu0  ;;  %v768_v4 = vadd.f32 %v2307_v0, %v3231_v10 }
 0x348   :  { %v760_v3 = vadd.f32 %v759_v5, %v3231_v10  ;;  %v2308_v25 = vpop.f32.mrb[2].mxu0 }
 0x349   :  { %v771_v34 = vadd.f32 %v2308_v25, %v3231_v10  ;;  %v762_v61 = vpop.f32.mrb[3].mxu0  ;;  %v3241_v2 = vmax.f32 %v768_v4, 0.0 }
 0x34a   :  { %v3236_v13 = vmax.f32 %v760_v3, 0.0  ;;  %v763_v6 = vadd.f32 %v762_v61, %v3231_v10 }
 0x34b   :  { %v3239_v17 = vmax.f32 %v771_v34, 0.0  ;;  %v920_v47 = vmul.f32 %v3241_v2, %v3241_v2 }
 0x34c   :  { %v3243_v28 = vmax.f32 %v763_v6, 0.0  ;;  %v918_v18 = vmul.f32 %v3236_v13, %v3236_v13 }
 0x34d   :  { %v921_v1 = vmul.f32 %v3239_v17, %v3239_v17  ;;  %v2503_v51 = vpack.c.bf16 %v3239_v17, %v3241_v2 }
 0x34e   :  { %v919_v19 = vmul.f32 %v3243_v28, %v3243_v28  ;;  %v2311_v31 = vpop.f32.mrb[4].mxu0  ;;  %v2499_v23 = vpack.c.bf16 %v3243_v28, %v3236_v13 }
 0x34f   :  { %v775_v20 = vpop.f32.mrb[5].mxu0  ;;  %v784_v21 = vadd.f32 %v2311_v31, %v3231_v10  ;;  %v2501_v48 = vpack.c.bf16 %v921_v1, %v920_v47 }
 0x350   :  { %v776_v46 = vadd.f32 %v775_v20, %v3231_v10  ;;  %v2312_v22 = vpop.f32.mrb[6].mxu0  ;;  %v2497_v42 = vpack.c.bf16 %v919_v19, %v918_v18 }
 0x351   :  { %v787_v37 = vadd.f32 %v2312_v22, %v3231_v10  ;;  %v778_v35 = vpop.f32.mrb[7].mxu0  ;;  %v3263_v50 = vmax.f32 %v784_v21, 0.0 }
 0x352   :  { %v3258_v41 = vmax.f32 %v776_v46, 0.0  ;;  %v779_v38 = vadd.f32 %v778_v35, %v3231_v10  ;;  %2498 = vmatprep.subr.bf16.mxu1 %v2497_v42 }
 0x353   :  { %v3261_v49 = vmax.f32 %v787_v37, 0.0  ;;  %2500 = vmatpush1.bf16.msra.mxu1 %v2499_v23  ;;  %v924_v62 = vmul.f32 %v3263_v50, %v3263_v50 }
 0x354   :  { %v3265_v29 = vmax.f32 %v779_v38, 0.0  ;;  %2502 = vmatprep.subr.bf16.mxu1 %v2501_v48  ;;  %v922_v52 = vmul.f32 %v3258_v41, %v3258_v41 }
 0x355   :  { %v925_v53 = vmul.f32 %v3261_v49, %v3261_v49  ;;  %v2511_v15 = vpack.c.bf16 %v3261_v49, %v3263_v50 }
 0x356   :  { %v923_v54 = vmul.f32 %v3265_v29, %v3265_v29  ;;  %v2315_v56 = vpop.f32.mrb[8].mxu0  ;;  %v2507_v39 = vpack.c.bf16 %v3265_v29, %v3258_v41 }
 0x357   :  { %v791_v57 = vpop.f32.mrb[9].mxu0  ;;  %2504 = vmatpush1.bf16.msra.mxu1 %v2503_v51  ;;  %v800_v63 = vadd.f32 %v2315_v56, %v3231_v10  ;;  %v2509_v11 = vpack.c.bf16 %v925_v53, %v924_v62 }
 0x358   :  { %v792_v7 = vadd.f32 %v791_v57, %v3231_v10  ;;  %v2316_v8 = vpop.f32.mrb[10].mxu0  ;;  %v2505_v40 = vpack.c.bf16 %v923_v54, %v922_v52 }
 0x359   :  { %v803_v55 = vadd.f32 %v2316_v8, %v3231_v10  ;;  %v794_v59 = vpop.f32.mrb[11].mxu0  ;;  %v3287_v32 = vmax.f32 %v800_v63, 0.0 }
 0x35a   :  { %v3282_v60 = vmax.f32 %v792_v7, 0.0  ;;  %v795_v58 = vadd.f32 %v794_v59, %v3231_v10  ;;  %2506 = vmatprep.subr.bf16.mxu1 %v2505_v40 }
 0x35b   :  { %v3285_v33 = vmax.f32 %v803_v55, 0.0  ;;  %2508 = vmatpush1.bf16.msra.mxu1 %v2507_v39  ;;  %v928_v44 = vmul.f32 %v3287_v32, %v3287_v32 }
 0x35c   :  { %v3289_v16 = vmax.f32 %v795_v58, 0.0  ;;  %2510 = vmatprep.subr.bf16.mxu1 %v2509_v11  ;;  %v926_v14 = vmul.f32 %v3282_v60, %v3282_v60 }
 0x35d   :  { %v929_v12 = vmul.f32 %v3285_v33, %v3285_v33  ;;  %v2519_v20 = vpack.c.bf16 %v3285_v33, %v3287_v32 }
 0x35e   :  { %v927_v36 = vmul.f32 %v3289_v16, %v3289_v16  ;;  %v2319_v45 = vpop.f32.mrb[12].mxu0  ;;  %v2515_v3 = vpack.c.bf16 %v3289_v16, %v3282_v60 }
 0x35f   :  { %v807_v9 = vpop.f32.mrb[13].mxu0  ;;  %2512 = vmatpush1.bf16.msra.mxu1 %v2511_v15  ;;  %v816_v43 = vadd.f32 %v2319_v45, %v3231_v10  ;;  %v2517_v18 = vpack.c.bf16 %v929_v12, %v928_v44 }
 0x360   :  { %v808_v0 = vadd.f32 %v807_v9, %v3231_v10  ;;  %v2320_v5 = vpop.f32.mrb[14].mxu0  ;;  %v2513_v4 = vpack.c.bf16 %v927_v36, %v926_v14 }
 0x361   :  { %v819_v25 = vadd.f32 %v2320_v5, %v3231_v10  ;;  %v810_v34 = vpop.f32.mrb[15].mxu0  ;;  %v3311_v19 = vmax.f32 %v816_v43, 0.0 }
 0x362   :  { %v3306_v61 = vmax.f32 %v808_v0, 0.0  ;;  %v811_v6 = vadd.f32 %v810_v34, %v3231_v10  ;;  %2514 = vmatprep.subr.bf16.mxu1 %v2513_v4 }
 0x363   :  { %v3309_v1 = vmax.f32 %v819_v25, 0.0  ;;  %2516 = vmatpush1.bf16.msra.mxu1 %v2515_v3  ;;  %v932_v23 = vmul.f32 %v3311_v19, %v3311_v19 }
 0x364   :  { %v3313_v31 = vmax.f32 %v811_v6, 0.0  ;;  %2518 = vmatprep.subr.bf16.mxu1 %v2517_v18  ;;  %v930_v47 = vmul.f32 %v3306_v61, %v3306_v61 }
 0x365   :  { %v933_v21 = vmul.f32 %v3309_v1, %v3309_v1  ;;  %v2527_v8 = vpack.c.bf16 %v3309_v1, %v3311_v19 }
 0x366   :  { %v931_v46 = vmul.f32 %v3313_v31, %v3313_v31  ;;  %v2323_v22 = vpop.f32.mrb[16].mxu0  ;;  %v2523_v51 = vpack.c.bf16 %v3313_v31, %v3306_v61 }
 0x367   :  { %v823_v42 = vpop.f32.mrb[17].mxu0  ;;  %2520 = vmatpush1.bf16.msra.mxu1 %v2519_v20  ;;  %v832_v37 = vadd.f32 %v2323_v22, %v3231_v10  ;;  %v2525_v57 = vpack.c.bf16 %v933_v21, %v932_v23 }
 0x368   :  { %v824_v35 = vadd.f32 %v823_v42, %v3231_v10  ;;  %v2324_v38 = vpop.f32.mrb[18].mxu0  ;;  %v2521_v48 = vpack.c.bf16 %v931_v46, %v930_v47 }
 0x369   :  { %v835_v52 = vadd.f32 %v2324_v38, %v3231_v10  ;;  %v826_v53 = vpop.f32.mrb[19].mxu0  ;;  %v3335_v63 = vmax.f32 %v832_v37, 0.0 }
 0x36a   :  { %v3330_v54 = vmax.f32 %v824_v35, 0.0  ;;  %v827_v56 = vadd.f32 %v826_v53, %v3231_v10  ;;  %2522 = vmatprep.subr.bf16.mxu1 %v2521_v48 }
 0x36b   :  { %v3333_v62 = vmax.f32 %v835_v52, 0.0  ;;  %2524 = vmatpush1.bf16.msra.mxu1 %v2523_v51  ;;  %v936_v11 = vmul.f32 %v3335_v63, %v3335_v63 }
 0x36c   :  { %v3337_v7 = vmax.f32 %v827_v56, 0.0  ;;  %2526 = vmatprep.subr.bf16.mxu1 %v2525_v57  ;;  %v934_v40 = vmul.f32 %v3330_v54, %v3330_v54 }
 0x36d   :  { %v937_v39 = vmul.f32 %v3333_v62, %v3333_v62  ;;  %v2535_v34 = vpack.c.bf16 %v3333_v62, %v3335_v63 }
 0x36e   :  { %v935_v55 = vmul.f32 %v3337_v7, %v3337_v7  ;;  %v2327_v59 = vpop.f32.mrb[20].mxu0  ;;  %v2531_v45 = vpack.c.bf16 %v3337_v7, %v3330_v54 }
 0x36f   :  { %v839_v58 = vpop.f32.mrb[21].mxu0  ;;  %2528 = vmatpush1.bf16.msra.mxu1 %v2527_v8  ;;  %v848_v15 = vadd.f32 %v2327_v59, %v3231_v10  ;;  %v2533_v5 = vpack.c.bf16 %v937_v39, %v936_v11 }
 0x370   :  { %v840_v14 = vadd.f32 %v839_v58, %v3231_v10  ;;  %v2328_v12 = vpop.f32.mrb[22].mxu0  ;;  %v2529_v36 = vpack.c.bf16 %v935_v55, %v934_v40 }
 0x371   :  { %v851_v9 = vadd.f32 %v2328_v12, %v3231_v10  ;;  %v842_v44 = vpop.f32.mrb[23].mxu0  ;;  %v3359_v3 = vmax.f32 %v848_v15, 0.0 }
 0x372   :  { %v3354_v43 = vmax.f32 %v840_v14, 0.0  ;;  %v843_v0 = vadd.f32 %v842_v44, %v3231_v10  ;;  %2530 = vmatprep.subr.bf16.mxu1 %v2529_v36 }
 0x373   :  { %v3357_v4 = vmax.f32 %v851_v9, 0.0  ;;  %2532 = vmatpush1.bf16.msra.mxu1 %v2531_v45  ;;  %v940_v46 = vmul.f32 %v3359_v3, %v3359_v3 }
 0x374   :  { %v3361_v25 = vmax.f32 %v843_v0, 0.0  ;;  %2534 = vmatprep.subr.bf16.mxu1 %v2533_v5  ;;  %v938_v6 = vmul.f32 %v3354_v43, %v3354_v43 }
 0x375   :  { %v941_v18 = vmul.f32 %v3357_v4, %v3357_v4  ;;  %v2543_v40 = vpack.c.bf16 %v3357_v4, %v3359_v3 }
 0x376   :  { %v939_v20 = vmul.f32 %v3361_v25, %v3361_v25  ;;  %v2331_v47 = vpop.f32.mrb[24].mxu0  ;;  %v2539_v35 = vpack.c.bf16 %v3361_v25, %v3354_v43 }
 0x377   :  { %v855_v21 = vpop.f32.mrb[25].mxu0  ;;  %2536 = vmatpush1.bf16.msra.mxu1 %v2535_v34  ;;  %v864_v22 = vadd.f32 %v2331_v47, %v3231_v10  ;;  %v2541_v53 = vpack.c.bf16 %v941_v18, %v940_v46 }
 0x378   :  { %v856_v42 = vadd.f32 %v855_v21, %v3231_v10  ;;  %v2332_v23 = vpop.f32.mrb[26].mxu0  ;;  %v2537_v37 = vpack.c.bf16 %v939_v20, %v938_v6 }
 0x379   :  { %v867_v38 = vadd.f32 %v2332_v23, %v3231_v10  ;;  %v858_v48 = vpop.f32.mrb[27].mxu0  ;;  %v3383_v57 = vmax.f32 %v864_v22, 0.0 }
 0x37a   :  { %v3378_v51 = vmax.f32 %v856_v42, 0.0  ;;  %v859_v52 = vadd.f32 %v858_v48, %v3231_v10  ;;  %2538 = vmatprep.subr.bf16.mxu1 %v2537_v37  ;;  %v2670_v48 = vld [vmem:[#allocation5 + $0xa0] sm:$0xff]  }
 0x37b   :  { %v3381_v56 = vmax.f32 %v867_v38, 0.0  ;;  %2540 = vmatpush1.bf16.msra.mxu1 %v2539_v35  ;;  %v944_v15 = vmul.f32 %v3383_v57, %v3383_v57  ;;  %2345 = vmatprep.subr.bf16.mxu0 %v2670_v48 }
 0x37c   :  { %v3385_v8 = vmax.f32 %v859_v52, 0.0  ;;  %2542 = vmatprep.subr.bf16.mxu1 %v2541_v53  ;;  %v942_v39 = vmul.f32 %v3378_v51, %v3378_v51  ;;  %2346 = vmatpush3.bf16.msra.mxu0 %v2670_v48  ;;  %v2671_v52 = vld [vmem:[#allocation5 + $0xa8] sm:$0xff]   ;;  %v2672_v53 = vld [vmem:[#allocation5 + $0xb0] sm:$0xff]  }
 0x37d   :  { %v945_v55 = vmul.f32 %v3381_v56, %v3381_v56  ;;  %v2551_v21 = vpack.c.bf16 %v3381_v56, %v3383_v57  ;;  %2347 = vmatprep.subr.bf16.mxu0 %v2671_v52 }
 0x37e   :  { %v943_v59 = vmul.f32 %v3385_v8, %v3385_v8  ;;  %v2335_v58 = vpop.f32.mrb[28].mxu0  ;;  %v2547_v9 = vpack.c.bf16 %v3385_v8, %v3378_v51 }
 0x37f   :  { %v871_v11 = vpop.f32.mrb[29].mxu0  ;;  %2544 = vmatpush1.bf16.msra.mxu1 %v2543_v40  ;;  %v880_v14 = vadd.f32 %v2335_v58, %v3231_v10  ;;  %v2549_v6 = vpack.c.bf16 %v945_v55, %v944_v15  ;;  %v2673_v40 = vld [vmem:[#allocation5 + $0xb8] sm:$0xff]  }
 0x380   :  { %v872_v12 = vadd.f32 %v871_v11, %v3231_v10  ;;  %v2336_v36 = vpop.f32.mrb[30].mxu0  ;;  %v2545_v45 = vpack.c.bf16 %v943_v59, %v942_v39  ;;  %2348 = vmatpush3.bf16.msra.mxu0 %v2671_v52 }
 0x381   :  { %v883_v44 = vadd.f32 %v2336_v36, %v3231_v10  ;;  %v874_v0 = vpop.f32.mrb[31].mxu0  ;;  %v3407_v20 = vmax.f32 %v880_v14, 0.0  ;;  %2349 = vmatprep.subr.bf16.mxu0 %v2672_v53  ;;  %v1040_v36 = vsub.s32 4, %v2987_v26 }
 0x382   :  { %v3402_v5 = vmax.f32 %v872_v12, 0.0  ;;  %v875_v34 = vadd.f32 %v874_v0, %v3231_v10  ;;  %2546 = vmatprep.subr.bf16.mxu1 %v2545_v45  ;;  %v3428_v45 = vld [vmem:[#allocation7] sm:$0xff] }
 0x383   :  { %v3405_v18 = vmax.f32 %v883_v44, 0.0  ;;  %2548 = vmatpush1.bf16.msra.mxu1 %v2547_v9  ;;  %v948_v42 = vmul.f32 %v3407_v20, %v3407_v20 }
 0x384   :  { %v3409_v47 = vmax.f32 %v875_v34, 0.0  ;;  %2550 = vmatprep.subr.bf16.mxu1 %v2549_v6  ;;  %v946_v46 = vmul.f32 %v3402_v5, %v3402_v5  ;;  %2350 = vmatpush3.bf16.msra.mxu0 %v2672_v53  ;;  %v1076_v34 = vsub.s32 5, %v2987_v26 }
 0x385   :  { %v949_v22 = vmul.f32 %v3405_v18, %v3405_v18  ;;  %v2559_v38 = vpack.c.bf16 %v3405_v18, %v3407_v20  ;;  %2351 = vmatprep.subr.bf16.mxu0 %v2673_v40 }
 0x386   :  { %v947_v10 = vmul.f32 %v3409_v47, %v3409_v47  ;;  %v2555_v37 = vpack.c.bf16 %v3409_v47, %v3402_v5 }
 0x387   :  { %2552 = vmatpush1.bf16.msra.mxu1 %v2551_v21  ;;  %v2557_v35 = vpack.c.bf16 %v949_v22, %v948_v42 }
 0x388   :  { %v2553_v23 = vpack.c.bf16 %v947_v10, %v946_v46  ;;  %2352 = vmatpush3.bf16.msra.mxu0 %v2673_v40 }
 0x38a   :  { %2554 = vmatprep.subr.bf16.mxu1 %v2553_v23 }
 0x38b   :  { %2556 = vmatpush1.bf16.msra.mxu1 %v2555_v37 }
 0x38c   :  { %2558 = vmatprep.subr.bf16.mxu1 %v2557_v35 }
 0x38f   :  { %2560 = vmatpush1.bf16.msra.mxu1 %v2559_v38 }
 0x392   :  { %1015 = vmatmul.mubr.f32.vlgmr.msra.gmra.mrb[34].mxu1 %v2918_v24 }
 0x393   :  { %1484 = vmatprep.mubr.f32.mxu1 %v2918_v24 }
 0x465   :  { %v1016_v39 = vpop.f32.mrb[34].mxu1 }
 0x466   :  { %v1021_v55 = vmul.f32 %v1016_v39, %v1016_v39  ;;  %v1018_v59 = vpop.f32.mrb[35].mxu1 }
 0x468   :  { %v1022_v58 = vsub.f32 %v1018_v59, %v1021_v55 }
 0x46a   :  { %v1023_v11 = vmax.f32 %v1022_v58, 0.0 }
 0x46c   :  { %v1024_v15 = vadd.f32 1e-05, %v1023_v11 }
 0x46e   :  { %2684 = vrsqrt.f32 %v1024_v15 }
 0x478   :  { %v2685_v14 = vpop.eup %2684 }
 0x479   :  { %v1027_v12 = vrot.slane %v2685_v14, 4 }
 0x47b   :  { %v1029_v9 = vmul.f32 %v3428_v45, %v1027_v12 }
 0x47d   :  { %v1031_v44 = vrot.slane %v1029_v9, 4  ;;  %v1041_v0 = vrot.slane %v1029_v9, %v1040_v36 }
 0x47f   :  { %v1033_v6 = vmul.f32 %v1031_v44, %v1016_v39  ;;  %v1042_v21 = vmul.f32 %v1041_v0, %v3236_v13  ;;  %v1043_v46 = vmul.f32 %v1041_v0, %v3243_v28  ;;  %v1044_v22 = vmul.f32 %v1041_v0, %v3241_v2 }
 0x480   :  { %v1045_v10 = vmul.f32 %v1041_v0, %v3239_v17  ;;  %v1046_v42 = vmul.f32 %v1041_v0, %v3258_v41  ;;  %v1047_v23 = vmul.f32 %v1041_v0, %v3265_v29  ;;  %v1048_v37 = vmul.f32 %v1041_v0, %v3263_v50 }
 0x481   :  { %v1035_v35 = vrot.slane %v1033_v6, 3  ;;  %v1049_v38 = vmul.f32 %v1041_v0, %v3261_v49  ;;  %v1050_v48 = vmul.f32 %v1041_v0, %v3282_v60  ;;  %v1051_v52 = vmul.f32 %v1041_v0, %v3289_v16 }
 0x482   :  { %v1052_v13 = vmul.f32 %v1041_v0, %v3287_v32  ;;  %v1053_v28 = vmul.f32 %v1041_v0, %v3285_v33  ;;  %v1054_v2 = vmul.f32 %v1041_v0, %v3306_v61  ;;  %v1055_v17 = vmul.f32 %v1041_v0, %v3313_v31 }
 0x483   :  { %v1037_v41 = vsub.f32 %v3428_v45, %v1035_v35  ;;  %v1056_v29 = vmul.f32 %v1041_v0, %v3311_v19  ;;  %v1057_v50 = vmul.f32 %v1041_v0, %v3309_v1  ;;  %v1058_v49 = vmul.f32 %v1041_v0, %v3330_v54 }
 0x484   :  { %v1059_v60 = vmul.f32 %v1041_v0, %v3337_v7  ;;  %v1060_v16 = vmul.f32 %v1041_v0, %v3335_v63  ;;  %v1061_v32 = vmul.f32 %v1041_v0, %v3333_v62  ;;  %v1062_v33 = vmul.f32 %v1041_v0, %v3354_v43 }
 0x485   :  { %v1077_v53 = vrot.slane %v1037_v41, %v1076_v34  ;;  %v1063_v61 = vmul.f32 %v1041_v0, %v3361_v25  ;;  %v1064_v31 = vmul.f32 %v1041_v0, %v3359_v3  ;;  %v1065_v40 = vmul.f32 %v1041_v0, %v3357_v4 }
 0x486   :  { %v1066_v19 = vmul.f32 %v1041_v0, %v3378_v51  ;;  %v1067_v1 = vmul.f32 %v1041_v0, %v3385_v8  ;;  %v1068_v54 = vmul.f32 %v1041_v0, %v3383_v57  ;;  %v1069_v7 = vmul.f32 %v1041_v0, %v3381_v56 }
 0x487   :  { %v1070_v63 = vmul.f32 %v1041_v0, %v3402_v5  ;;  %v1071_v62 = vmul.f32 %v1041_v0, %v3409_v47  ;;  %v1072_v43 = vmul.f32 %v1041_v0, %v3407_v20  ;;  %v1073_v25 = vmul.f32 %v1041_v0, %v3405_v18 }
 0x488   :  { %v1080_v39 = vadd.f32 %v1077_v53, %v1044_v22  ;;  %v1081_v3 = vadd.f32 %v1077_v53, %v1045_v10  ;;  %v1078_v55 = vadd.f32 %v1077_v53, %v1042_v21  ;;  %v1079_v4 = vadd.f32 %v1077_v53, %v1043_v46 }
 0x489   :  { %v1082_v59 = vadd.f32 %v1077_v53, %v1046_v42  ;;  %v1083_v51 = vadd.f32 %v1077_v53, %v1047_v23  ;;  %v1084_v58 = vadd.f32 %v1077_v53, %v1048_v37  ;;  %v1085_v8 = vadd.f32 %v1077_v53, %v1049_v38 }
 0x48a   :  { %v1111_v11 = vpack.c.bf16 %v1081_v3, %v1080_v39  ;;  %v1110_v57 = vpack.c.bf16 %v1079_v4, %v1078_v55  ;;  %v1086_v15 = vadd.f32 %v1077_v53, %v1050_v48  ;;  %v1087_v56 = vadd.f32 %v1077_v53, %v1051_v52 }
 0x48b   :  { %v1112_v14 = vpack.c.bf16 %v1083_v51, %v1082_v59  ;;  %v1113_v5 = vpack.c.bf16 %v1085_v8, %v1084_v58  ;;  %v1088_v12 = vadd.f32 %v1077_v53, %v1052_v13  ;;  %v1089_v47 = vadd.f32 %v1077_v53, %v1053_v28 }
 0x48c   :  { %2353 = vmatprep.mubr.bf16.mxu0 %v1110_v57  ;;  %v1114_v20 = vpack.c.bf16 %v1087_v56, %v1086_v15  ;;  %v1090_v36 = vadd.f32 %v1077_v53, %v1054_v2  ;;  %v1091_v18 = vadd.f32 %v1077_v53, %v1055_v17  ;;  %v1092_v9 = vadd.f32 %v1077_v53, %v1056_v29 }
 0x48d   :  { %2354 = vmatmul.mubr.bf16.vlgmr.msra.gmra.mrb[32].mxu0 %v1111_v11  ;;  %v1115_v44 = vpack.c.bf16 %v1089_v47, %v1088_v12  ;;  %v1093_v0 = vadd.f32 %v1077_v53, %v1057_v50  ;;  %v1094_v34 = vadd.f32 %v1077_v53, %v1058_v49  ;;  %v1095_v6 = vadd.f32 %v1077_v53, %v1059_v60 }
 0x48e   :  { %2357 = vmatprep.mubr.bf16.mxu0 %v1112_v14  ;;  %v1116_v21 = vpack.c.bf16 %v1091_v18, %v1090_v36  ;;  %v1096_v46 = vadd.f32 %v1077_v53, %v1060_v16  ;;  %v1097_v22 = vadd.f32 %v1077_v53, %v1061_v32  ;;  %v1098_v10 = vadd.f32 %v1077_v53, %v1062_v33 }
 0x48f   :  { %v1117_v42 = vpack.c.bf16 %v1093_v0, %v1092_v9  ;;  %v1118_v23 = vpack.c.bf16 %v1095_v6, %v1094_v34  ;;  %v1099_v37 = vadd.f32 %v1077_v53, %v1063_v61  ;;  %v1100_v35 = vadd.f32 %v1077_v53, %v1064_v31  ;;  %v2674_v61 = vld [vmem:[#allocation5 + $0xc0] sm:$0xff]   ;;  %v2675_v31 = vld [vmem:[#allocation5 + $0xc8] sm:$0xff]  }
 0x490   :  { %v1119_v38 = vpack.c.bf16 %v1097_v22, %v1096_v46  ;;  %v1101_v48 = vadd.f32 %v1077_v53, %v1065_v40  ;;  %v1102_v52 = vadd.f32 %v1077_v53, %v1066_v19  ;;  %v1103_v13 = vadd.f32 %v1077_v53, %v1067_v1  ;;  %2385 = vmatprep.subr.bf16.mxu0 %v2674_v61  ;;  %v2677_v40 = vld [vmem:[#allocation5 + $0xd8] sm:$0xff]  }
 0x491   :  { %v1120_v28 = vpack.c.bf16 %v1099_v37, %v1098_v10  ;;  %v1104_v2 = vadd.f32 %v1077_v53, %v1068_v54  ;;  %v1105_v17 = vadd.f32 %v1077_v53, %v1069_v7  ;;  %v1106_v41 = vadd.f32 %v1077_v53, %v1070_v63  ;;  %2386 = vmatpush3.bf16.msra.mxu0 %v2674_v61 }
 0x492   :  { %v1121_v29 = vpack.c.bf16 %v1101_v48, %v1100_v35  ;;  %v1122_v50 = vpack.c.bf16 %v1103_v13, %v1102_v52  ;;  %v1107_v49 = vadd.f32 %v1077_v53, %v1071_v62  ;;  %v1108_v60 = vadd.f32 %v1077_v53, %v1072_v43  ;;  %2387 = vmatprep.subr.bf16.mxu0 %v2675_v31 }
 0x493   :  { %v1123_v39 = vpack.c.bf16 %v1105_v17, %v1104_v2  ;;  %v1109_v16 = vadd.f32 %v1077_v53, %v1073_v25  ;;  %v2676_v53 = vld [vmem:[#allocation5 + $0xd0] sm:$0xff]   ;;  %v1145_v19 = vsub.s32 6, %v2987_v26 }
 0x494   :  { %v1124_v32 = vpack.c.bf16 %v1107_v49, %v1106_v41 }
 0x495   :  { %2358 = vmatmul.mubr.bf16.gmra.mrb[36].mxu0 %v1113_v5  ;;  %v1125_v33 = vpack.c.bf16 %v1109_v16, %v1108_v60  ;;  %v3467_v1 = vrot.slane %v3428_v45, %v1145_v19 }
 0x496   :  { %2361 = vmatprep.mubr.bf16.mxu0 %v1114_v20  ;;  %2388 = vmatpush3.bf16.msra.mxu0 %v2675_v31 }
 0x497   :  { %2389 = vmatprep.subr.bf16.mxu0 %v2676_v53 }
 0x49a   :  { %2390 = vmatpush3.bf16.msra.mxu0 %v2676_v53 }
 0x49b   :  { %2391 = vmatprep.subr.bf16.mxu0 %v2677_v40 }
 0x49d   :  { %2362 = vmatmul.mubr.bf16.gmra.mrb[40].mxu0 %v1115_v44 }
 0x49e   :  { %2365 = vmatprep.mubr.bf16.mxu0 %v1116_v21  ;;  %2392 = vmatpush3.bf16.msra.mxu0 %v2677_v40 }
 0x4a5   :  { %2366 = vmatmul.mubr.bf16.gmra.mrb[44].mxu0 %v1117_v42 }
 0x4a6   :  { %2369 = vmatprep.mubr.bf16.mxu0 %v1118_v23 }
 0x4ad   :  { %2370 = vmatmul.mubr.bf16.gmra.mrb[48].mxu0 %v1119_v38 }
 0x4ae   :  { %2373 = vmatprep.mubr.bf16.mxu0 %v1120_v28 }
 0x4b5   :  { %2374 = vmatmul.mubr.bf16.gmra.mrb[52].mxu0 %v1121_v29 }
 0x4b6   :  { %2377 = vmatprep.mubr.bf16.mxu0 %v1122_v50 }
 0x4bd   :  { %2378 = vmatmul.mubr.bf16.gmra.mrb[56].mxu0 %v1123_v39 }
 0x4be   :  { %2381 = vmatprep.mubr.bf16.mxu0 %v1124_v32 }
 0x4c5   :  { %2382 = vmatmul.mubr.bf16.gmra.mrb[60].mxu0 %v1125_v33 }
 0x560   :  { %v2355_v54 = vpop.f32.mrb[32].mxu0 }
 0x561   :  { %v1229_v7 = vpop.f32.mrb[33].mxu0  ;;  %v1238_v63 = vadd.f32 %v2355_v54, %v3467_v1 }
 0x562   :  { %v1230_v62 = vadd.f32 %v1229_v7, %v3467_v1  ;;  %v2356_v43 = vpop.f32.mrb[34].mxu0 }
 0x563   :  { %v1241_v25 = vadd.f32 %v2356_v43, %v3467_v1  ;;  %v1232_v3 = vpop.f32.mrb[35].mxu0  ;;  %v3477_v51 = vmax.f32 %v1238_v63, 0.0 }
 0x564   :  { %v3472_v55 = vmax.f32 %v1230_v62, 0.0  ;;  %v1233_v4 = vadd.f32 %v1232_v3, %v3467_v1 }
 0x565   :  { %v3475_v59 = vmax.f32 %v1241_v25, 0.0  ;;  %v1390_v14 = vmul.f32 %v3477_v51, %v3477_v51 }
 0x566   :  { %v3479_v58 = vmax.f32 %v1233_v4, 0.0  ;;  %v1388_v8 = vmul.f32 %v3472_v55, %v3472_v55 }
 0x567   :  { %v1391_v11 = vmul.f32 %v3475_v59, %v3475_v59  ;;  %v2567_v22 = vpack.c.bf16 %v3475_v59, %v3477_v51 }
 0x568   :  { %v1389_v57 = vmul.f32 %v3479_v58, %v3479_v58  ;;  %v2359_v15 = vpop.f32.mrb[36].mxu0  ;;  %v2563_v36 = vpack.c.bf16 %v3479_v58, %v3472_v55 }
 0x569   :  { %v1245_v56 = vpop.f32.mrb[37].mxu0  ;;  %v1254_v5 = vadd.f32 %v2359_v15, %v3467_v1  ;;  %v2565_v34 = vpack.c.bf16 %v1391_v11, %v1390_v14 }
 0x56a   :  { %v1246_v12 = vadd.f32 %v1245_v56, %v3467_v1  ;;  %v2360_v47 = vpop.f32.mrb[38].mxu0  ;;  %v2561_v20 = vpack.c.bf16 %v1389_v57, %v1388_v8 }
 0x56b   :  { %v1257_v18 = vadd.f32 %v2360_v47, %v3467_v1  ;;  %v1248_v9 = vpop.f32.mrb[39].mxu0  ;;  %v3499_v21 = vmax.f32 %v1254_v5, 0.0 }
 0x56c   :  { %v3494_v44 = vmax.f32 %v1246_v12, 0.0  ;;  %v1249_v0 = vadd.f32 %v1248_v9, %v3467_v1  ;;  %2562 = vmatprep.subr.bf16.mxu1 %v2561_v20 }
 0x56d   :  { %v3497_v6 = vmax.f32 %v1257_v18, 0.0  ;;  %2564 = vmatpush1.bf16.msra.mxu1 %v2563_v36  ;;  %v1394_v38 = vmul.f32 %v3499_v21, %v3499_v21 }
 0x56e   :  { %v3501_v46 = vmax.f32 %v1249_v0, 0.0  ;;  %2566 = vmatprep.subr.bf16.mxu1 %v2565_v34  ;;  %v1392_v10 = vmul.f32 %v3494_v44, %v3494_v44 }
 0x56f   :  { %v1395_v42 = vmul.f32 %v3497_v6, %v3497_v6  ;;  %v2575_v32 = vpack.c.bf16 %v3497_v6, %v3499_v21 }
 0x570   :  { %v1393_v23 = vmul.f32 %v3501_v46, %v3501_v46  ;;  %v2363_v37 = vpop.f32.mrb[40].mxu0  ;;  %v2571_v2 = vpack.c.bf16 %v3501_v46, %v3494_v44 }
 0x571   :  { %v1261_v35 = vpop.f32.mrb[41].mxu0  ;;  %2568 = vmatpush1.bf16.msra.mxu1 %v2567_v22  ;;  %v1270_v48 = vadd.f32 %v2363_v37, %v3467_v1  ;;  %v2573_v49 = vpack.c.bf16 %v1395_v42, %v1394_v38 }
 0x572   :  { %v1262_v52 = vadd.f32 %v1261_v35, %v3467_v1  ;;  %v2364_v13 = vpop.f32.mrb[42].mxu0  ;;  %v2569_v28 = vpack.c.bf16 %v1393_v23, %v1392_v10 }
 0x573   :  { %v1273_v17 = vadd.f32 %v2364_v13, %v3467_v1  ;;  %v1264_v41 = vpop.f32.mrb[43].mxu0  ;;  %v3523_v39 = vmax.f32 %v1270_v48, 0.0 }
 0x574   :  { %v3518_v29 = vmax.f32 %v1262_v52, 0.0  ;;  %v1265_v50 = vadd.f32 %v1264_v41, %v3467_v1  ;;  %2570 = vmatprep.subr.bf16.mxu1 %v2569_v28 }
 0x575   :  { %v3521_v60 = vmax.f32 %v1273_v17, 0.0  ;;  %2572 = vmatpush1.bf16.msra.mxu1 %v2571_v2  ;;  %v1398_v19 = vmul.f32 %v3523_v39, %v3523_v39 }
 0x576   :  { %v3525_v16 = vmax.f32 %v1265_v50, 0.0  ;;  %2574 = vmatprep.subr.bf16.mxu1 %v2573_v49  ;;  %v1396_v33 = vmul.f32 %v3518_v29, %v3518_v29 }
 0x577   :  { %v1399_v61 = vmul.f32 %v3521_v60, %v3521_v60  ;;  %v2583_v14 = vpack.c.bf16 %v3521_v60, %v3523_v39 }
 0x578   :  { %v1397_v31 = vmul.f32 %v3525_v16, %v3525_v16  ;;  %v2367_v53 = vpop.f32.mrb[44].mxu0  ;;  %v2579_v43 = vpack.c.bf16 %v3525_v16, %v3518_v29 }
 0x579   :  { %v1277_v40 = vpop.f32.mrb[45].mxu0  ;;  %2576 = vmatpush1.bf16.msra.mxu1 %v2575_v32  ;;  %v1286_v54 = vadd.f32 %v2367_v53, %v3467_v1  ;;  %v2581_v11 = vpack.c.bf16 %v1399_v61, %v1398_v19 }
 0x57a   :  { %v1278_v7 = vadd.f32 %v1277_v40, %v3467_v1  ;;  %v2368_v63 = vpop.f32.mrb[46].mxu0  ;;  %v2577_v62 = vpack.c.bf16 %v1397_v31, %v1396_v33 }
 0x57b   :  { %v1289_v25 = vadd.f32 %v2368_v63, %v3467_v1  ;;  %v1280_v3 = vpop.f32.mrb[47].mxu0  ;;  %v3547_v15 = vmax.f32 %v1286_v54, 0.0 }
 0x57c   :  { %v3542_v4 = vmax.f32 %v1278_v7, 0.0  ;;  %v1281_v8 = vadd.f32 %v1280_v3, %v3467_v1  ;;  %2578 = vmatprep.subr.bf16.mxu1 %v2577_v62 }
 0x57d   :  { %v3545_v57 = vmax.f32 %v1289_v25, 0.0  ;;  %2580 = vmatpush1.bf16.msra.mxu1 %v2579_v43  ;;  %v1402_v18 = vmul.f32 %v3547_v15, %v3547_v15 }
 0x57e   :  { %v3549_v56 = vmax.f32 %v1281_v8, 0.0  ;;  %2582 = vmatprep.subr.bf16.mxu1 %v2581_v11  ;;  %v1400_v5 = vmul.f32 %v3542_v4, %v3542_v4 }
 0x57f   :  { %v1403_v12 = vmul.f32 %v3545_v57, %v3545_v57  ;;  %v2591_v28 = vpack.c.bf16 %v3545_v57, %v3547_v15 }
 0x580   :  { %v1401_v47 = vmul.f32 %v3549_v56, %v3549_v56  ;;  %v2371_v20 = vpop.f32.mrb[48].mxu0  ;;  %v2587_v10 = vpack.c.bf16 %v3549_v56, %v3542_v4 }
 0x581   :  { %v1293_v36 = vpop.f32.mrb[49].mxu0  ;;  %2584 = vmatpush1.bf16.msra.mxu1 %v2583_v14  ;;  %v1302_v9 = vadd.f32 %v2371_v20, %v3467_v1  ;;  %v2589_v38 = vpack.c.bf16 %v1403_v12, %v1402_v18 }
 0x582   :  { %v1294_v0 = vadd.f32 %v1293_v36, %v3467_v1  ;;  %v2372_v34 = vpop.f32.mrb[50].mxu0  ;;  %v2585_v22 = vpack.c.bf16 %v1401_v47, %v1400_v5 }
 0x583   :  { %v1305_v42 = vadd.f32 %v2372_v34, %v3467_v1  ;;  %v1296_v23 = vpop.f32.mrb[51].mxu0  ;;  %v3571_v52 = vmax.f32 %v1302_v9, 0.0 }
 0x584   :  { %v3566_v37 = vmax.f32 %v1294_v0, 0.0  ;;  %v1297_v35 = vadd.f32 %v1296_v23, %v3467_v1  ;;  %2586 = vmatprep.subr.bf16.mxu1 %v2585_v22 }
 0x585   :  { %v3569_v48 = vmax.f32 %v1305_v42, 0.0  ;;  %2588 = vmatpush1.bf16.msra.mxu1 %v2587_v10  ;;  %v1406_v32 = vmul.f32 %v3571_v52, %v3571_v52 }
 0x586   :  { %v3573_v13 = vmax.f32 %v1297_v35, 0.0  ;;  %2590 = vmatprep.subr.bf16.mxu1 %v2589_v38  ;;  %v1404_v2 = vmul.f32 %v3566_v37, %v3566_v37 }
 0x587   :  { %v1407_v17 = vmul.f32 %v3569_v48, %v3569_v48  ;;  %v2599_v8 = vpack.c.bf16 %v3569_v48, %v3571_v52 }
 0x588   :  { %v1405_v41 = vmul.f32 %v3573_v13, %v3573_v13  ;;  %v2375_v50 = vpop.f32.mrb[52].mxu0  ;;  %v2595_v40 = vpack.c.bf16 %v3573_v13, %v3566_v37 }
 0x589   :  { %v1309_v49 = vpop.f32.mrb[53].mxu0  ;;  %2592 = vmatpush1.bf16.msra.mxu1 %v2591_v28  ;;  %v1318_v33 = vadd.f32 %v2375_v50, %v3467_v1  ;;  %v2597_v62 = vpack.c.bf16 %v1407_v17, %v1406_v32 }
 0x58a   :  { %v1310_v61 = vadd.f32 %v1309_v49, %v3467_v1  ;;  %v2376_v31 = vpop.f32.mrb[54].mxu0  ;;  %v2593_v53 = vpack.c.bf16 %v1405_v41, %v1404_v2 }
 0x58b   :  { %v1321_v19 = vadd.f32 %v2376_v31, %v3467_v1  ;;  %v1312_v54 = vpop.f32.mrb[55].mxu0  ;;  %v3595_v25 = vmax.f32 %v1318_v33, 0.0 }
 0x58c   :  { %v3590_v7 = vmax.f32 %v1310_v61, 0.0  ;;  %v1313_v63 = vadd.f32 %v1312_v54, %v3467_v1  ;;  %2594 = vmatprep.subr.bf16.mxu1 %v2593_v53 }
 0x58d   :  { %v3593_v43 = vmax.f32 %v1321_v19, 0.0  ;;  %2596 = vmatpush1.bf16.msra.mxu1 %v2595_v40  ;;  %v1410_v20 = vmul.f32 %v3595_v25, %v3595_v25 }
 0x58e   :  { %v3597_v3 = vmax.f32 %v1313_v63, 0.0  ;;  %2598 = vmatprep.subr.bf16.mxu1 %v2597_v62  ;;  %v1408_v11 = vmul.f32 %v3590_v7, %v3590_v7 }
 0x58f   :  { %v1411_v14 = vmul.f32 %v3593_v43, %v3593_v43  ;;  %v2607_v17 = vpack.c.bf16 %v3593_v43, %v3595_v25 }
 0x590   :  { %v1409_v5 = vmul.f32 %v3597_v3, %v3597_v3  ;;  %v2379_v12 = vpop.f32.mrb[56].mxu0  ;;  %v2603_v34 = vpack.c.bf16 %v3597_v3, %v3590_v7 }
 0x591   :  { %v1325_v47 = vpop.f32.mrb[57].mxu0  ;;  %2600 = vmatpush1.bf16.msra.mxu1 %v2599_v8  ;;  %v1334_v36 = vadd.f32 %v2379_v12, %v3467_v1  ;;  %v2605_v35 = vpack.c.bf16 %v1411_v14, %v1410_v20 }
 0x592   :  { %v1326_v18 = vadd.f32 %v1325_v47, %v3467_v1  ;;  %v2380_v9 = vpop.f32.mrb[58].mxu0  ;;  %v2601_v0 = vpack.c.bf16 %v1409_v5, %v1408_v11 }
 0x593   :  { %v1337_v22 = vadd.f32 %v2380_v9, %v3467_v1  ;;  %v1328_v10 = vpop.f32.mrb[59].mxu0  ;;  %v3619_v28 = vmax.f32 %v1334_v36, 0.0 }
 0x594   :  { %v3614_v42 = vmax.f32 %v1326_v18, 0.0  ;;  %v1329_v23 = vadd.f32 %v1328_v10, %v3467_v1  ;;  %2602 = vmatprep.subr.bf16.mxu1 %v2601_v0 }
 0x595   :  { %v3617_v38 = vmax.f32 %v1337_v22, 0.0  ;;  %2604 = vmatpush1.bf16.msra.mxu1 %v2603_v34  ;;  %v1414_v61 = vmul.f32 %v3619_v28, %v3619_v28 }
 0x596   :  { %v3621_v2 = vmax.f32 %v1329_v23, 0.0  ;;  %2606 = vmatprep.subr.bf16.mxu1 %v2605_v35  ;;  %v1412_v41 = vmul.f32 %v3614_v42, %v3614_v42  ;;  %v2678_v23 = vld [vmem:[#allocation5 + $0xe0] sm:$0xff]   ;;  %v2679_v35 = vld [vmem:[#allocation5 + $0xe8] sm:$0xff]  }
 0x597   :  { %v1415_v50 = vmul.f32 %v3617_v38, %v3617_v38  ;;  %v2615_v20 = vpack.c.bf16 %v3617_v38, %v3619_v28  ;;  %2393 = vmatprep.subr.bf16.mxu0 %v2678_v23 }
 0x598   :  { %v1413_v49 = vmul.f32 %v3621_v2, %v3621_v2  ;;  %v2383_v32 = vpop.f32.mrb[60].mxu0  ;;  %v2611_v54 = vpack.c.bf16 %v3621_v2, %v3614_v42  ;;  %2394 = vmatpush3.bf16.msra.mxu0 %v2678_v23 }
 0x599   :  { %v1341_v33 = vpop.f32.mrb[61].mxu0  ;;  %2608 = vmatpush1.bf16.msra.mxu1 %v2607_v17  ;;  %v1350_v31 = vadd.f32 %v2383_v32, %v3467_v1  ;;  %v2613_v14 = vpack.c.bf16 %v1415_v50, %v1414_v61  ;;  %2395 = vmatprep.subr.bf16.mxu0 %v2679_v35  ;;  %v2680_v17 = vld [vmem:[#allocation5 + $0xf0] sm:$0xff]  }
 0x59a   :  { %v1342_v53 = vadd.f32 %v1341_v33, %v3467_v1  ;;  %v2384_v40 = vpop.f32.mrb[62].mxu0  ;;  %v2609_v19 = vpack.c.bf16 %v1413_v49, %v1412_v41  ;;  %v2681_v41 = vld [vmem:[#allocation5 + $0xf8] sm:$0xff]  }
 0x59b   :  { %v1353_v63 = vadd.f32 %v2384_v40, %v3467_v1  ;;  %v1344_v62 = vpop.f32.mrb[63].mxu0  ;;  %v3643_v12 = vmax.f32 %v1350_v31, 0.0  ;;  %v1507_v40 = vsub.s32 7, %v2987_v26 }
 0x59c   :  { %v3638_v8 = vmax.f32 %v1342_v53, 0.0  ;;  %v1345_v11 = vadd.f32 %v1344_v62, %v3467_v1  ;;  %2610 = vmatprep.subr.bf16.mxu1 %v2609_v19  ;;  %2396 = vmatpush3.bf16.msra.mxu0 %v2679_v35  ;;  %v3664_v62 = vld [vmem:[#allocation7 + $0x8] sm:$0x3] }
 0x59d   :  { %v3641_v5 = vmax.f32 %v1353_v63, 0.0  ;;  %2612 = vmatpush1.bf16.msra.mxu1 %v2611_v54  ;;  %v1418_v9 = vmul.f32 %v3643_v12, %v3643_v12  ;;  %2397 = vmatprep.subr.bf16.mxu0 %v2680_v17 }
 0x59e   :  { %v3645_v47 = vmax.f32 %v1345_v11, 0.0  ;;  %2614 = vmatprep.subr.bf16.mxu1 %v2613_v14  ;;  %v1416_v36 = vmul.f32 %v3638_v8, %v3638_v8 }
 0x59f   :  { %v1419_v18 = vmul.f32 %v3641_v5, %v3641_v5  ;;  %v2623_v10 = vpack.c.bf16 %v3641_v5, %v3643_v12 }
 0x5a0   :  { %v1417_v1 = vmul.f32 %v3645_v47, %v3645_v47  ;;  %v2619_v34 = vpack.c.bf16 %v3645_v47, %v3638_v8  ;;  %2398 = vmatpush3.bf16.msra.mxu0 %v2680_v17 }
 0x5a1   :  { %2616 = vmatpush1.bf16.msra.mxu1 %v2615_v20  ;;  %v2621_v22 = vpack.c.bf16 %v1419_v18, %v1418_v9  ;;  %2399 = vmatprep.subr.bf16.mxu0 %v2681_v41 }
 0x5a2   :  { %v2617_v0 = vpack.c.bf16 %v1417_v1, %v1416_v36 }
 0x5a4   :  { %2618 = vmatprep.subr.bf16.mxu1 %v2617_v0  ;;  %2400 = vmatpush3.bf16.msra.mxu0 %v2681_v41 }
 0x5a5   :  { %2620 = vmatpush1.bf16.msra.mxu1 %v2619_v34 }
 0x5a6   :  { %2622 = vmatprep.subr.bf16.mxu1 %v2621_v22 }
 0x5a9   :  { %2624 = vmatpush1.bf16.msra.mxu1 %v2623_v10 }
 0x5ac   :  { %1485 = vmatmul.mubr.f32.vlgmr.msra.gmra.mrb[36].mxu1 %v2918_v24 }
 0x67f   :  { %v1486_v50 = vpop.f32.mrb[36].mxu1 }
 0x680   :  { %v1491_v49 = vmul.f32 %v1486_v50, %v1486_v50  ;;  %v1488_v32 = vpop.f32.mrb[37].mxu1 }
 0x682   :  { %v1492_v33 = vsub.f32 %v1488_v32, %v1491_v49 }
 0x684   :  { %v1493_v61 = vmax.f32 %v1492_v33, 0.0 }
 0x686   :  { %v1494_v31 = vadd.f32 1e-05, %v1493_v61 }
 0x688   :  { %2686 = vrsqrt.f32 %v1494_v31 }
 0x692   :  { %v2687_v24 = vpop.eup %2686 }
 0x693   :  { %v1497_v53 = vrot.slane %v2687_v24, 1 }
 0x695   :  { %v1499_v19 = vmul.f32 %v3428_v45, %v1497_v53 }
 0x697   :  { %v1501_v54 = vrot.slane %v1499_v19, 7  ;;  %v1508_v63 = vrot.slane %v1499_v19, %v1507_v40 }
 0x699   :  { %v1503_v11 = vmul.f32 %v1501_v54, %v1486_v50  ;;  %v1509_v14 = vmul.f32 %v1508_v63, %v3472_v55  ;;  %v1510_v20 = vmul.f32 %v1508_v63, %v3479_v58  ;;  %v1511_v36 = vmul.f32 %v1508_v63, %v3477_v51 }
 0x69a   :  { %v1512_v18 = vmul.f32 %v1508_v63, %v3475_v59  ;;  %v1513_v1 = vmul.f32 %v1508_v63, %v3494_v44  ;;  %v1514_v9 = vmul.f32 %v1508_v63, %v3501_v46  ;;  %v1515_v0 = vmul.f32 %v1508_v63, %v3499_v21 }
 0x69b   :  { %v1504_v45 = vsub.f32 %v3664_v62, %v1503_v11  ;;  %v1516_v34 = vmul.f32 %v1508_v63, %v3497_v6  ;;  %v1517_v22 = vmul.f32 %v1508_v63, %v3518_v29  ;;  %v1518_v55 = vmul.f32 %v1508_v63, %v3525_v16 }
 0x69c   :  { %v1519_v58 = vmul.f32 %v1508_v63, %v3523_v39  ;;  %v1520_v51 = vmul.f32 %v1508_v63, %v3521_v60  ;;  %v1521_v59 = vmul.f32 %v1508_v63, %v3542_v4  ;;  %v1522_v44 = vmul.f32 %v1508_v63, %v3549_v56 }
 0x69d   :  { %v3683_v46 = vrot.slane %v1504_v45, %v109_v27  ;;  %v1523_v21 = vmul.f32 %v1508_v63, %v3547_v15  ;;  %v1524_v6 = vmul.f32 %v1508_v63, %v3545_v57  ;;  %v1525_v29 = vmul.f32 %v1508_v63, %v3566_v37 }
 0x69e   :  { %v1526_v16 = vmul.f32 %v1508_v63, %v3573_v13  ;;  %v1527_v39 = vmul.f32 %v1508_v63, %v3571_v52  ;;  %v1528_v60 = vmul.f32 %v1508_v63, %v3569_v48  ;;  %v1529_v4 = vmul.f32 %v1508_v63, %v3590_v7 }
 0x69f   :  { %v1530_v56 = vmul.f32 %v1508_v63, %v3597_v3  ;;  %v1531_v10 = vmul.f32 %v1508_v63, %v3595_v25  ;;  %v1532_v27 = vmul.f32 %v1508_v63, %v3593_v43  ;;  %v1533_v15 = vmul.f32 %v1508_v63, %v3614_v42 }
 0x6a0   :  { %v1534_v57 = vmul.f32 %v1508_v63, %v3621_v2  ;;  %v1535_v37 = vmul.f32 %v1508_v63, %v3619_v28  ;;  %v1536_v13 = vmul.f32 %v1508_v63, %v3617_v38  ;;  %v1537_v52 = vmul.f32 %v1508_v63, %v3638_v8 }
 0x6a1   :  { %v1538_v48 = vmul.f32 %v1508_v63, %v3645_v47  ;;  %v1539_v7 = vmul.f32 %v1508_v63, %v3643_v12  ;;  %v1540_v3 = vmul.f32 %v1508_v63, %v3641_v5  ;;  %v1547_v25 = vadd.f32 %v3683_v46, %v1511_v36 }
 0x6a2   :  { %v1548_v43 = vadd.f32 %v3683_v46, %v1512_v18  ;;  %v1545_v42 = vadd.f32 %v3683_v46, %v1509_v14  ;;  %v1546_v2 = vadd.f32 %v3683_v46, %v1510_v20  ;;  %v1549_v28 = vadd.f32 %v3683_v46, %v1513_v1 }
 0x6a3   :  { %v1550_v38 = vadd.f32 %v3683_v46, %v1514_v9  ;;  %v1551_v8 = vadd.f32 %v3683_v46, %v1515_v0  ;;  %v1552_v47 = vadd.f32 %v3683_v46, %v1516_v34  ;;  %v1553_v12 = vadd.f32 %v3683_v46, %v1517_v22 }
 0x6a4   :  { %v1578_v23 = vpack.c.bf16 %v1548_v43, %v1547_v25  ;;  %v1577_v5 = vpack.c.bf16 %v1546_v2, %v1545_v42  ;;  %v1554_v35 = vadd.f32 %v3683_v46, %v1518_v55  ;;  %v1555_v17 = vadd.f32 %v3683_v46, %v1519_v58 }
 0x6a5   :  { %v1579_v41 = vpack.c.bf16 %v1550_v38, %v1549_v28  ;;  %v1580_v50 = vpack.c.bf16 %v1552_v47, %v1551_v8  ;;  %v1556_v49 = vadd.f32 %v3683_v46, %v1520_v51  ;;  %v1557_v32 = vadd.f32 %v3683_v46, %v1521_v59 }
 0x6a6   :  { %2401 = vmatprep.mubr.bf16.mxu0 %v1577_v5  ;;  %v1581_v33 = vpack.c.bf16 %v1554_v35, %v1553_v12  ;;  %v1558_v61 = vadd.f32 %v3683_v46, %v1522_v44  ;;  %v1559_v31 = vadd.f32 %v3683_v46, %v1523_v21  ;;  %v1560_v24 = vadd.f32 %v3683_v46, %v1524_v6 }
 0x6a7   :  { %2402 = vmatmul.mubr.bf16.vlgmr.msra.gmra.mrb[64].mxu0 %v1578_v23  ;;  %v1582_v53 = vpack.c.bf16 %v1556_v49, %v1555_v17  ;;  %v1561_v40 = vadd.f32 %v3683_v46, %v1525_v29  ;;  %v1562_v19 = vadd.f32 %v3683_v46, %v1526_v16  ;;  %v1563_v54 = vadd.f32 %v3683_v46, %v1527_v39 }
 0x6a8   :  { %2405 = vmatprep.mubr.bf16.mxu0 %v1579_v41  ;;  %v1583_v63 = vpack.c.bf16 %v1558_v61, %v1557_v32  ;;  %v1584_v11 = vpack.c.bf16 %v1560_v24, %v1559_v31  ;;  %v1564_v14 = vadd.f32 %v3683_v46, %v1528_v60  ;;  %v1565_v20 = vadd.f32 %v3683_v46, %v1529_v4 }
 0x6a9   :  { %v1585_v36 = vpack.c.bf16 %v1562_v19, %v1561_v40  ;;  %v1566_v18 = vadd.f32 %v3683_v46, %v1530_v56  ;;  %v1567_v1 = vadd.f32 %v3683_v46, %v1531_v10  ;;  %v1568_v9 = vadd.f32 %v3683_v46, %v1532_v27 }
 0x6aa   :  { %v1586_v0 = vpack.c.bf16 %v1564_v14, %v1563_v54  ;;  %v1569_v45 = vadd.f32 %v3683_v46, %v1533_v15  ;;  %v1570_v34 = vadd.f32 %v3683_v46, %v1534_v57  ;;  %v1571_v22 = vadd.f32 %v3683_v46, %v1535_v37 }
 0x6ab   :  { %v1587_v55 = vpack.c.bf16 %v1566_v18, %v1565_v20  ;;  %v1588_v58 = vpack.c.bf16 %v1568_v9, %v1567_v1  ;;  %v1572_v51 = vadd.f32 %v3683_v46, %v1536_v13  ;;  %v1573_v59 = vadd.f32 %v3683_v46, %v1537_v52 }
 0x6ac   :  { %v1589_v44 = vpack.c.bf16 %v1570_v34, %v1569_v45  ;;  %v1574_v21 = vadd.f32 %v3683_v46, %v1538_v48  ;;  %v1575_v6 = vadd.f32 %v3683_v46, %v1539_v7  ;;  %v1576_v29 = vadd.f32 %v3683_v46, %v1540_v3 }
 0x6ad   :  { %v1590_v16 = vpack.c.bf16 %v1572_v51, %v1571_v22  ;;  %v3738_v46 = vrot.slane %v3664_v62, %v570_v30 }
 0x6ae   :  { %v1591_v39 = vpack.c.bf16 %v1574_v21, %v1573_v59  ;;  %v1592_v60 = vpack.c.bf16 %v1576_v29, %v1575_v6 }
 0x6af   :  { %2406 = vmatmul.mubr.bf16.gmra.mrb[68].mxu0 %v1580_v50 }
 0x6b0   :  { %2409 = vmatprep.mubr.bf16.mxu0 %v1581_v33 }
 0x6b7   :  { %2410 = vmatmul.mubr.bf16.gmra.mrb[72].mxu0 %v1582_v53 }
 0x6b8   :  { %2413 = vmatprep.mubr.bf16.mxu0 %v1583_v63 }
 0x6bf   :  { %2414 = vmatmul.mubr.bf16.gmra.mrb[76].mxu0 %v1584_v11 }
 0x6c0   :  { %2417 = vmatprep.mubr.bf16.mxu0 %v1585_v36 }
 0x6c7   :  { %2418 = vmatmul.mubr.bf16.gmra.mrb[80].mxu0 %v1586_v0 }
 0x6c8   :  { %2421 = vmatprep.mubr.bf16.mxu0 %v1587_v55 }
 0x6cf   :  { %2422 = vmatmul.mubr.bf16.gmra.mrb[84].mxu0 %v1588_v58 }
 0x6d0   :  { %2425 = vmatprep.mubr.bf16.mxu0 %v1589_v44 }
 0x6d7   :  { %2426 = vmatmul.mubr.bf16.gmra.mrb[88].mxu0 %v1590_v16 }
 0x6d8   :  { %2429 = vmatprep.mubr.bf16.mxu0 %v1591_v39 }
 0x6df   :  { %2430 = vmatmul.mubr.bf16.gmra.mrb[92].mxu0 %v1592_v60 }
 0x77a   :  { %v2403_v4 = vpop.f32.mrb[64].mxu0 }
 0x77b   :  { %v1705_v56 = vadd.f32 %v2403_v4, %v3738_v46  ;;  %v1696_v10 = vpop.f32.mrb[65].mxu0 }
 0x77c   :  { %v1697_v27 = vadd.f32 %v1696_v10, %v3738_v46  ;;  %v2404_v15 = vpop.f32.mrb[66].mxu0 }
 0x77d   :  { %v2115_v57 = vmul.f32 -1.442695, %v1705_v56  ;;  %v1708_v37 = vadd.f32 %v2404_v15, %v3738_v46  ;;  %v1699_v13 = vpop.f32.mrb[67].mxu0 }
 0x77e   :  { %v2113_v52 = vmul.f32 -1.442695, %v1697_v27  ;;  %v1700_v48 = vadd.f32 %v1699_v13, %v3738_v46 }
 0x77f   :  { %2688 = vpow2.f32 %v2115_v57  ;;  %v2116_v7 = vmul.f32 -1.442695, %v1708_v37 }
 0x780   :  { %2690 = vpow2.f32 %v2113_v52  ;;  %v2114_v26 = vmul.f32 -1.442695, %v1700_v48 }
 0x781   :  { %2692 = vpow2.f32 %v2116_v7 }
 0x782   :  { %2694 = vpow2.f32 %v2114_v26  ;;  %v2407_v30 = vpop.f32.mrb[68].mxu0 }
 0x783   :  { %v1721_v62 = vadd.f32 %v2407_v30, %v3738_v46  ;;  %v1712_v3 = vpop.f32.mrb[69].mxu0 }
 0x784   :  { %v1713_v25 = vadd.f32 %v1712_v3, %v3738_v46  ;;  %v2408_v43 = vpop.f32.mrb[70].mxu0 }
 0x785   :  { %v2119_v42 = vmul.f32 -1.442695, %v1721_v62  ;;  %v1724_v2 = vadd.f32 %v2408_v43, %v3738_v46  ;;  %v1715_v28 = vpop.f32.mrb[71].mxu0 }
 0x786   :  { %v2117_v38 = vmul.f32 -1.442695, %v1713_v25  ;;  %v1716_v8 = vadd.f32 %v1715_v28, %v3738_v46 }
 0x787   :  { %2696 = vpow2.f32 %v2119_v42  ;;  %v2120_v47 = vmul.f32 -1.442695, %v1724_v2 }
 0x788   :  { %2698 = vpow2.f32 %v2117_v38  ;;  %v2118_v12 = vmul.f32 -1.442695, %v1716_v8 }
 0x789   :  { %v2689_v23 = vpop.eup %2688  ;;  %2700 = vpow2.f32 %v2120_v47 }
 0x78a   :  { %v2691_v5 = vpop.eup %2690  ;;  %v1921_v35 = vadd.f32 1.0, %v2689_v23  ;;  %2702 = vpow2.f32 %v2118_v12  ;;  %v2411_v17 = vpop.f32.mrb[72].mxu0 }
 0x78b   :  { %v2693_v41 = vpop.eup %2692  ;;  %v1919_v50 = vadd.f32 1.0, %v2691_v5  ;;  %v1737_v49 = vadd.f32 %v2411_v17, %v3738_v46  ;;  %v1728_v32 = vpop.f32.mrb[73].mxu0 }
 0x78c   :  { %v2695_v33 = vpop.eup %2694  ;;  %2704 = vrcp.f32 %v1921_v35  ;;  %v1922_v61 = vadd.f32 1.0, %v2693_v41  ;;  %v1729_v31 = vadd.f32 %v1728_v32, %v3738_v46  ;;  %v2412_v24 = vpop.f32.mrb[74].mxu0 }
 0x78d   :  { %2706 = vrcp.f32 %v1919_v50  ;;  %v1920_v53 = vadd.f32 1.0, %v2695_v33  ;;  %v2123_v40 = vmul.f32 -1.442695, %v1737_v49  ;;  %v1740_v19 = vadd.f32 %v2412_v24, %v3738_v46  ;;  %v1731_v54 = vpop.f32.mrb[75].mxu0 }
 0x78e   :  { %2708 = vrcp.f32 %v1922_v61  ;;  %v2121_v63 = vmul.f32 -1.442695, %v1729_v31  ;;  %v1732_v11 = vadd.f32 %v1731_v54, %v3738_v46 }
 0x78f   :  { %2710 = vrcp.f32 %v1920_v53  ;;  %v2124_v14 = vmul.f32 -1.442695, %v1740_v19 }
 0x790   :  { %2712 = vpow2.f32 %v2123_v40  ;;  %v2122_v20 = vmul.f32 -1.442695, %v1732_v11 }
 0x791   :  { %v2697_v36 = vpop.eup %2696  ;;  %2714 = vpow2.f32 %v2121_v63 }
 0x792   :  { %v2699_v18 = vpop.eup %2698  ;;  %v1925_v1 = vadd.f32 1.0, %v2697_v36  ;;  %2716 = vpow2.f32 %v2124_v14  ;;  %v2415_v9 = vpop.f32.mrb[76].mxu0 }
 0x793   :  { %v2701_v0 = vpop.eup %2700  ;;  %v1923_v45 = vadd.f32 1.0, %v2699_v18  ;;  %2718 = vpow2.f32 %v2122_v20  ;;  %v1753_v34 = vadd.f32 %v2415_v9, %v3738_v46  ;;  %v1744_v22 = vpop.f32.mrb[77].mxu0 }
 0x794   :  { %v2703_v55 = vpop.eup %2702  ;;  %2720 = vrcp.f32 %v1925_v1  ;;  %v1926_v58 = vadd.f32 1.0, %v2701_v0  ;;  %v1745_v51 = vadd.f32 %v1744_v22, %v3738_v46  ;;  %v2416_v59 = vpop.f32.mrb[78].mxu0 }
 0x795   :  { %2722 = vrcp.f32 %v1923_v45  ;;  %v1924_v44 = vadd.f32 1.0, %v2703_v55  ;;  %v2127_v21 = vmul.f32 -1.442695, %v1753_v34  ;;  %v1756_v6 = vadd.f32 %v2416_v59, %v3738_v46  ;;  %v1747_v29 = vpop.f32.mrb[79].mxu0 }
 0x796   :  { %v2705_v16 = vpop.eup %2704  ;;  %2724 = vrcp.f32 %v1926_v58  ;;  %v2125_v39 = vmul.f32 -1.442695, %v1745_v51  ;;  %v1748_v60 = vadd.f32 %v1747_v29, %v3738_v46 }
 0x797   :  { %v2707_v4 = vpop.eup %2706  ;;  %2017 = vst [vmem:[#allocation8 + $0x10] sm:$0xff] %v2705_v16  ;;  %2726 = vrcp.f32 %v1924_v44  ;;  %v2128_v56 = vmul.f32 -1.442695, %v1756_v6 }
 0x798   :  { %v2709_v10 = vpop.eup %2708  ;;  %2015 = vst [vmem:[#allocation8] sm:$0xff] %v2707_v4  ;;  %2728 = vpow2.f32 %v2127_v21  ;;  %v2126_v27 = vmul.f32 -1.442695, %v1748_v60 }
 0x799   :  { %v2711_v15 = vpop.eup %2710  ;;  %2018 = vst [vmem:[#allocation8 + $0x18] sm:$0xff] %v2709_v10  ;;  %2730 = vpow2.f32 %v2125_v39 }
 0x79a   :  { %v2713_v57 = vpop.eup %2712  ;;  %2016 = vst [vmem:[#allocation8 + $0x8] sm:$0xff] %v2711_v15  ;;  %2732 = vpow2.f32 %v2128_v56  ;;  %v2419_v37 = vpop.f32.mrb[80].mxu0 }
 0x79b   :  { %v2715_v13 = vpop.eup %2714  ;;  %v1929_v52 = vadd.f32 1.0, %v2713_v57  ;;  %2734 = vpow2.f32 %v2126_v27  ;;  %v1769_v48 = vadd.f32 %v2419_v37, %v3738_v46  ;;  %v1760_v7 = vpop.f32.mrb[81].mxu0 }
 0x79c   :  { %v2717_v26 = vpop.eup %2716  ;;  %v1927_v30 = vadd.f32 1.0, %v2715_v13  ;;  %v1761_v62 = vadd.f32 %v1760_v7, %v3738_v46  ;;  %v2420_v3 = vpop.f32.mrb[82].mxu0 }
 0x79d   :  { %v2719_v25 = vpop.eup %2718  ;;  %2736 = vrcp.f32 %v1929_v52  ;;  %v1930_v43 = vadd.f32 1.0, %v2717_v26  ;;  %v2131_v42 = vmul.f32 -1.442695, %v1769_v48  ;;  %v1772_v2 = vadd.f32 %v2420_v3, %v3738_v46  ;;  %v1763_v28 = vpop.f32.mrb[83].mxu0 }
 0x79e   :  { %v2721_v38 = vpop.eup %2720  ;;  %2738 = vrcp.f32 %v1927_v30  ;;  %v1928_v8 = vadd.f32 1.0, %v2719_v25  ;;  %v2129_v47 = vmul.f32 -1.442695, %v1761_v62  ;;  %v1764_v12 = vadd.f32 %v1763_v28, %v3738_v46 }
 0x79f   :  { %v2723_v23 = vpop.eup %2722  ;;  %2021 = vst [vmem:[#allocation8 + $0x30] sm:$0xff] %v2721_v38  ;;  %2740 = vrcp.f32 %v1930_v43  ;;  %v2132_v5 = vmul.f32 -1.442695, %v1772_v2 }
 0x7a0   :  { %v2725_v35 = vpop.eup %2724  ;;  %2019 = vst [vmem:[#allocation8 + $0x20] sm:$0xff] %v2723_v23  ;;  %2742 = vrcp.f32 %v1928_v8  ;;  %v2130_v17 = vmul.f32 -1.442695, %v1764_v12 }
 0x7a1   :  { %v2727_v41 = vpop.eup %2726  ;;  %2022 = vst [vmem:[#allocation8 + $0x38] sm:$0xff] %v2725_v35  ;;  %2744 = vpow2.f32 %v2131_v42 }
 0x7a2   :  { %v2729_v50 = vpop.eup %2728  ;;  %2020 = vst [vmem:[#allocation8 + $0x28] sm:$0xff] %v2727_v41  ;;  %2746 = vpow2.f32 %v2129_v47  ;;  %v2423_v49 = vpop.f32.mrb[84].mxu0 }
 0x7a3   :  { %v2731_v32 = vpop.eup %2730  ;;  %v1933_v33 = vadd.f32 1.0, %v2729_v50  ;;  %2748 = vpow2.f32 %v2132_v5  ;;  %v1785_v61 = vadd.f32 %v2423_v49, %v3738_v46  ;;  %v1776_v31 = vpop.f32.mrb[85].mxu0 }
 0x7a4   :  { %v2733_v24 = vpop.eup %2732  ;;  %v1931_v53 = vadd.f32 1.0, %v2731_v32  ;;  %2750 = vpow2.f32 %v2130_v17  ;;  %v1777_v40 = vadd.f32 %v1776_v31, %v3738_v46  ;;  %v2424_v19 = vpop.f32.mrb[86].mxu0 }
 0x7a5   :  { %v2735_v54 = vpop.eup %2734  ;;  %2752 = vrcp.f32 %v1933_v33  ;;  %v1934_v63 = vadd.f32 1.0, %v2733_v24  ;;  %v2135_v11 = vmul.f32 -1.442695, %v1785_v61  ;;  %v1788_v14 = vadd.f32 %v2424_v19, %v3738_v46  ;;  %v1779_v20 = vpop.f32.mrb[87].mxu0 }
 0x7a6   :  { %2754 = vrcp.f32 %v1931_v53  ;;  %v1932_v36 = vadd.f32 1.0, %v2735_v54  ;;  %v2133_v18 = vmul.f32 -1.442695, %v1777_v40  ;;  %v1780_v1 = vadd.f32 %v1779_v20, %v3738_v46 }
 0x7a7   :  { %v2737_v9 = vpop.eup %2736  ;;  %2756 = vrcp.f32 %v1934_v63  ;;  %v2136_v0 = vmul.f32 -1.442695, %v1788_v14 }
 0x7a8   :  { %v2739_v45 = vpop.eup %2738  ;;  %2025 = vst [vmem:[#allocation8 + $0x50] sm:$0xff] %v2737_v9  ;;  %2758 = vrcp.f32 %v1932_v36  ;;  %v2134_v34 = vmul.f32 -1.442695, %v1780_v1 }
 0x7a9   :  { %v2741_v22 = vpop.eup %2740  ;;  %2023 = vst [vmem:[#allocation8 + $0x40] sm:$0xff] %v2739_v45  ;;  %2760 = vpow2.f32 %v2135_v11 }
 0x7aa   :  { %v2743_v55 = vpop.eup %2742  ;;  %2026 = vst [vmem:[#allocation8 + $0x58] sm:$0xff] %v2741_v22  ;;  %2762 = vpow2.f32 %v2133_v18  ;;  %v2427_v58 = vpop.f32.mrb[88].mxu0 }
 0x7ab   :  { %v2745_v51 = vpop.eup %2744  ;;  %2024 = vst [vmem:[#allocation8 + $0x48] sm:$0xff] %v2743_v55  ;;  %2764 = vpow2.f32 %v2136_v0  ;;  %v1801_v59 = vadd.f32 %v2427_v58, %v3738_v46  ;;  %v1792_v44 = vpop.f32.mrb[89].mxu0 }
 0x7ac   :  { %v2747_v21 = vpop.eup %2746  ;;  %v1937_v6 = vadd.f32 1.0, %v2745_v51  ;;  %2766 = vpow2.f32 %v2134_v34  ;;  %v1793_v29 = vadd.f32 %v1792_v44, %v3738_v46  ;;  %v2428_v16 = vpop.f32.mrb[90].mxu0 }
 0x7ad   :  { %v2749_v39 = vpop.eup %2748  ;;  %v1935_v60 = vadd.f32 1.0, %v2747_v21  ;;  %v1804_v4 = vadd.f32 %v2428_v16, %v3738_v46  ;;  %v1795_v56 = vpop.f32.mrb[91].mxu0  ;;  %v2139_v15 = vmul.f32 -1.442695, %v1801_v59 }
 0x7ae   :  { %v2751_v10 = vpop.eup %2750  ;;  %2768 = vrcp.f32 %v1937_v6  ;;  %v1938_v27 = vadd.f32 1.0, %v2749_v39  ;;  %v1796_v57 = vadd.f32 %v1795_v56, %v3738_v46  ;;  %v2137_v52 = vmul.f32 -1.442695, %v1793_v29 }
 0x7af   :  { %v2753_v37 = vpop.eup %2752  ;;  %2770 = vrcp.f32 %v1935_v60  ;;  %v1936_v13 = vadd.f32 1.0, %v2751_v10  ;;  %v2140_v7 = vmul.f32 -1.442695, %v1804_v4 }
 0x7b0   :  { %v2755_v48 = vpop.eup %2754  ;;  %2029 = vst [vmem:[#allocation8 + $0x70] sm:$0xff] %v2753_v37  ;;  %2772 = vrcp.f32 %v1938_v27  ;;  %v2138_v30 = vmul.f32 -1.442695, %v1796_v57 }
 0x7b1   :  { %v2757_v26 = vpop.eup %2756  ;;  %2027 = vst [vmem:[#allocation8 + $0x60] sm:$0xff] %v2755_v48  ;;  %2774 = vrcp.f32 %v1936_v13 }
 0x7b2   :  { %v2759_v62 = vpop.eup %2758  ;;  %2030 = vst [vmem:[#allocation8 + $0x78] sm:$0xff] %v2757_v26  ;;  %2776 = vpow2.f32 %v2139_v15  ;;  %v2431_v3 = vpop.f32.mrb[92].mxu0 }
 0x7b3   :  { %v2761_v25 = vpop.eup %2760  ;;  %2028 = vst [vmem:[#allocation8 + $0x68] sm:$0xff] %v2759_v62  ;;  %2778 = vpow2.f32 %v2137_v52  ;;  %v1817_v43 = vadd.f32 %v2431_v3, %v3738_v46  ;;  %v1808_v42 = vpop.f32.mrb[93].mxu0 }
 0x7b4   :  { %v2763_v2 = vpop.eup %2762  ;;  %v1941_v28 = vadd.f32 1.0, %v2761_v25  ;;  %2780 = vpow2.f32 %v2140_v7  ;;  %v1809_v38 = vadd.f32 %v1808_v42, %v3738_v46  ;;  %v2432_v8 = vpop.f32.mrb[94].mxu0 }
 0x7b5   :  { %v2765_v47 = vpop.eup %2764  ;;  %v1939_v12 = vadd.f32 1.0, %v2763_v2  ;;  %2782 = vpow2.f32 %v2138_v30  ;;  %v1820_v23 = vadd.f32 %v2432_v8, %v3738_v46  ;;  %v1811_v5 = vpop.f32.mrb[95].mxu0  ;;  %v2143_v41 = vmul.f32 -1.442695, %v1817_v43 }
 0x7b6   :  { %v2767_v35 = vpop.eup %2766  ;;  %2784 = vrcp.f32 %v1941_v28  ;;  %v1942_v17 = vadd.f32 1.0, %v2765_v47  ;;  %v1812_v50 = vadd.f32 %v1811_v5, %v3738_v46  ;;  %v2141_v32 = vmul.f32 -1.442695, %v1809_v38 }
 0x7b7   :  { %2786 = vrcp.f32 %v1939_v12  ;;  %v1940_v49 = vadd.f32 1.0, %v2767_v35  ;;  %v2144_v61 = vmul.f32 -1.442695, %v1820_v23 }
 0x7b8   :  { %v2769_v33 = vpop.eup %2768  ;;  %2788 = vrcp.f32 %v1942_v17  ;;  %v2142_v24 = vmul.f32 -1.442695, %v1812_v50 }
 0x7b9   :  { %v2771_v31 = vpop.eup %2770  ;;  %2033 = vst [vmem:[#allocation8 + $0x90] sm:$0xff] %v2769_v33  ;;  %2790 = vrcp.f32 %v1940_v49 }
 0x7ba   :  { %v2773_v53 = vpop.eup %2772  ;;  %2031 = vst [vmem:[#allocation8 + $0x80] sm:$0xff] %v2771_v31  ;;  %2792 = vpow2.f32 %v2143_v41 }
 0x7bb   :  { %v2775_v40 = vpop.eup %2774  ;;  %2034 = vst [vmem:[#allocation8 + $0x98] sm:$0xff] %v2773_v53  ;;  %2794 = vpow2.f32 %v2141_v32 }
 0x7bc   :  { %v2777_v19 = vpop.eup %2776  ;;  %2032 = vst [vmem:[#allocation8 + $0x88] sm:$0xff] %v2775_v40  ;;  %2796 = vpow2.f32 %v2144_v61 }
 0x7bd   :  { %v2779_v46 = vpop.eup %2778  ;;  %v1945_v54 = vadd.f32 1.0, %v2777_v19  ;;  %2798 = vpow2.f32 %v2142_v24 }
 0x7be   :  { %v2781_v63 = vpop.eup %2780  ;;  %v1943_v11 = vadd.f32 1.0, %v2779_v46 }
 0x7bf   :  { %v2783_v14 = vpop.eup %2782  ;;  %2800 = vrcp.f32 %v1945_v54  ;;  %v1946_v20 = vadd.f32 1.0, %v2781_v63 }
 0x7c0   :  { %v2785_v36 = vpop.eup %2784  ;;  %2802 = vrcp.f32 %v1943_v11  ;;  %v1944_v18 = vadd.f32 1.0, %v2783_v14 }
 0x7c1   :  { %v2787_v1 = vpop.eup %2786  ;;  %2037 = vst [vmem:[#allocation8 + $0xb0] sm:$0xff] %v2785_v36  ;;  %2804 = vrcp.f32 %v1946_v20 }
 0x7c2   :  { %v2789_v9 = vpop.eup %2788  ;;  %2035 = vst [vmem:[#allocation8 + $0xa0] sm:$0xff] %v2787_v1  ;;  %2806 = vrcp.f32 %v1944_v18 }
 0x7c3   :  { %v2791_v0 = vpop.eup %2790  ;;  %2038 = vst [vmem:[#allocation8 + $0xb8] sm:$0xff] %v2789_v9 }
 0x7c4   :  { %v2793_v45 = vpop.eup %2792  ;;  %2036 = vst [vmem:[#allocation8 + $0xa8] sm:$0xff] %v2791_v0 }
 0x7c5   :  { %v2795_v34 = vpop.eup %2794  ;;  %v1949_v22 = vadd.f32 1.0, %v2793_v45 }
 0x7c6   :  { %v2797_v55 = vpop.eup %2796  ;;  %v1947_v58 = vadd.f32 1.0, %v2795_v34 }
 0x7c7   :  { %v2799_v51 = vpop.eup %2798  ;;  %2808 = vrcp.f32 %v1949_v22  ;;  %v1950_v59 = vadd.f32 1.0, %v2797_v55 }
 0x7c8   :  { %2810 = vrcp.f32 %v1947_v58  ;;  %v1948_v44 = vadd.f32 1.0, %v2799_v51 }
 0x7c9   :  { %v2801_v21 = vpop.eup %2800  ;;  %2812 = vrcp.f32 %v1950_v59 }
 0x7ca   :  { %v2803_v6 = vpop.eup %2802  ;;  %2041 = vst [vmem:[#allocation8 + $0xd0] sm:$0xff] %v2801_v21  ;;  %2814 = vrcp.f32 %v1948_v44 }
 0x7cb   :  { %v2805_v29 = vpop.eup %2804  ;;  %2039 = vst [vmem:[#allocation8 + $0xc0] sm:$0xff] %v2803_v6 }
 0x7cc   :  { %v2807_v16 = vpop.eup %2806  ;;  %2042 = vst [vmem:[#allocation8 + $0xd8] sm:$0xff] %v2805_v29 }
 0x7cd   :  { %2040 = vst [vmem:[#allocation8 + $0xc8] sm:$0xff] %v2807_v16 }
 0x7d1   :  { %v2809_v39 = vpop.eup %2808 }
 0x7d2   :  { %v2811_v60 = vpop.eup %2810  ;;  %2045 = vst [vmem:[#allocation8 + $0xf0] sm:$0xff] %v2809_v39 }
 0x7d3   :  { %v2813_v4 = vpop.eup %2812  ;;  %2043 = vst [vmem:[#allocation8 + $0xe0] sm:$0xff] %v2811_v60 }
 0x7d4   :  { %v2815_v56 = vpop.eup %2814  ;;  %2046 = vst [vmem:[#allocation8 + $0xf8] sm:$0xff] %v2813_v4 }
 0x7d5   :  { %2044 = vst [vmem:[#allocation8 + $0xe8] sm:$0xff] %v2815_v56 }
 0x7d6   :  { %2894 = shalt.err (!%p2891_p0)
}
 0x7d7   :  { %s2895_s27 = scalar_lea.hbm %s3790_s3, 4096 }
 0x7d8   :  { %p2896_p1 = scmp.ne.s32.totalorder %s3790_s3, %s2895_s27  ;;  %p2899_p2 = scmp.lt.u32.totalorder %s2895_s27, %s3790_s3 }
 0x7da   :  { %p2901_p3 = pnand %p2899_p2, %p2896_p1 }
 0x7dc   :  { %2904 = shalt.err (!%p2901_p3)
}
 0x7dd   :  { %2058 = dma.vmem_to_hbm [thread:$0]  %s2053_s23, 4096, %s3790_s3, [#allocation4], %s2916_s0, %s2916_s0, %s2917_s15  }
 0x7de   :  { %2909 = dma.done.wait [#allocation4], 4096  }
 0x7df   :  { %2910 = vsyncadd [#allocation4], 4294963200 }
 0x7e0   :  { %2062 = vsyncpa [#allocation3], 1 }
 0x7e1   :  { %2063 = vsyncpa [#allocation6], 1 }
 0x7e2   :  { %2064 = vsyncpa [#allocation4], 1 }

</bundles_post_ra>
